<compile_context>
chip_gen: v5e
topology: v5e:2x2
jax: 0.10.0
libtpu: 0.0.40
codegen_flags: <defaults>
</compile_context>

<pallas_src>
import functools

import jax
import jax.numpy as jnp
from jax.experimental import pallas as pl
from jax.experimental.pallas import tpu as pltpu

EPS = 1e-5


def _round_up(x, m):
    return (x + m - 1) // m * m


# ---------------------------------------------------------------------------
# Fused kernel: conv1 -> BN1 -> ReLU -> conv2 -> BN2 -> ReLU, whole batch in one
# grid step.  Each conv = one MXU contraction per sample over a scratch-stacked RHS.
# ---------------------------------------------------------------------------
def _bn_block_kernel(x_ref, w1_ref, w2_ref, g1_ref, b1_ref, g2_ref, b2_ref,
                     m1_ref, m2_ref, out_ref, rhs1_ref, x2_ref, rhs2_ref, *,
                     n_batch, taps1, frame1, inv_count1,
                     taps2, frame2, inv_count2, a1_off):
    w1 = w1_ref[...]                                   # [C1, T*Cin_pad]
    w2 = w2_ref[...]                                   # [C2, T*C1_pad]
    m1 = m1_ref[...]                                   # [1, frame1] valid-column mask
    m2 = m2_ref[...]                                   # [1, frame2]
    rows1 = rhs1_ref.shape[0] // len(taps1)            # Cin_pad
    rows2 = rhs2_ref.shape[0] // len(taps2)            # C1_pad

    # ---- layer 1: conv (single K = T*Cin_pad contraction per sample) + stats ----
    y1 = []
    s1 = jnp.zeros((w1.shape[0], 1), jnp.float32)
    q1 = jnp.zeros((w1.shape[0], 1), jnp.float32)
    for n in range(n_batch):                           # static unroll, tiny N
        xn = x_ref[n]                                  # [Cin_pad, F1]
        for t, off in enumerate(taps1):                # stack taps on aligned sublanes
            rhs1_ref[t * rows1:(t + 1) * rows1, :] = xn[:, off:off + frame1]
        y = jnp.dot(w1, rhs1_ref[...], preferred_element_type=jnp.float32)
        ym = y * m1                                    # zero wrap-around columns
        s1 = s1 + jnp.sum(ym, axis=1, keepdims=True)
        q1 = q1 + jnp.sum(ym * ym, axis=1, keepdims=True)
        y1.append(y)

    mean1 = s1 * inv_count1
    var1 = jnp.maximum(q1 * inv_count1 - mean1 * mean1, 0.0)
    scale1 = g1_ref[...] * jax.lax.rsqrt(var1 + EPS)
    shift1 = b1_ref[...] - mean1 * scale1

    # ---- layer 2: BN1+ReLU on the fly, activations written straight into the
    #      layer-2 padded-flat layout held in VMEM scratch ----
    x2_ref[...] = jnp.zeros_like(x2_ref)               # padding rows/cols stay zero
    y2 = []
    s2 = jnp.zeros((w2.shape[0], 1), jnp.float32)
    q2 = jnp.zeros((w2.shape[0], 1), jnp.float32)
    for n in range(n_batch):
        a1 = jnp.maximum(y1[n] * scale1 + shift1, 0.0) * m1   # mask -> pad cols = 0
        x2_ref[0:a1.shape[0], a1_off:a1_off + frame1] = a1    # 128-aligned lane start
        x2 = x2_ref[...]                                      # [C1_pad, x2_len]
        for t, off in enumerate(taps2):                       # offsets pre-shifted
            rhs2_ref[t * rows2:(t + 1) * rows2, :] = x2[:, off:off + frame2]
        y = jnp.dot(w2, rhs2_ref[...], preferred_element_type=jnp.float32)
        ym = y * m2
        s2 = s2 + jnp.sum(ym, axis=1, keepdims=True)
        q2 = q2 + jnp.sum(ym * ym, axis=1, keepdims=True)
        y2.append(y)

    mean2 = s2 * inv_count2
    var2 = jnp.maximum(q2 * inv_count2 - mean2 * mean2, 0.0)
    scale2 = g2_ref[...] * jax.lax.rsqrt(var2 + EPS)
    shift2 = b2_ref[...] - mean2 * scale2

    for n in range(n_batch):
        out_ref[n] = jnp.maximum(y2[n] * scale2 + shift2, 0.0)


# ---------------------------------------------------------------------------
# Host-side layout helpers
# ---------------------------------------------------------------------------
def _geometry(h, w, k, p, d):
    hp, wp = h + 2 * p, w + 2 * p
    ho, wo = hp - d * (k - 1), wp - d * (k - 1)
    frame = ho * wp                                  # wp cols per output row, wo valid
    flat = hp * wp + (k - 1) * d                     # flattened padded input length
    taps = tuple(i * d * wp + j * d for i in range(k) for j in range(k))
    return hp, wp, ho, wo, frame, flat, taps


def _weight_2d(w, c_in_pad):
    # [Cout, Cin, kh, kw] -> [Cout, T*Cin_pad], row order (tap t, channel c).
    c_out, c_in, kh, kw = w.shape
    wt = jnp.transpose(w, (0, 2, 3, 1)).reshape(c_out, kh * kw, c_in)
    wt = jnp.pad(wt, ((0, 0), (0, 0), (0, c_in_pad - c_in)))
    return wt.reshape(c_out, kh * kw * c_in_pad).astype(jnp.float32)


def weight_norm(v, g):
    # v: [Cout, Cin, kh, kw], g: [Cout];  w = g * v / ||v|| (per output channel)
    norm = jnp.sqrt(jnp.sum(v * v, axis=(1, 2, 3), keepdims=True))
    return g.reshape(-1, 1, 1, 1) * v / norm


# ---------------------------------------------------------------------------
# Public forward: NCHW in -> NCHW out (matches the PyTorch module).
# ---------------------------------------------------------------------------
def bn_block_forward(x_nchw, params, *, kernel_size, stride, padding, dilation=1):
    if stride != 1:
        # TODO(synk): stride > 1 would need strided window slices when building the
        # stacked RHS; the module is used with stride=1.
        raise NotImplementedError("Pallas BNBlock path implemented for stride=1.")

    w1 = weight_norm(params["v1"], params["g1"])
    w2 = weight_norm(params["v2"], params["g2"])
    N, Cin, H, W = x_nchw.shape
    C1, C2 = w1.shape[0], w2.shape[0]
    k, p, d = kernel_size, padding, dilation
    T = k * k

    Hp1, Wp1, Ho1, Wo1, frame1, F1, taps1 = _geometry(H, W, k, p, d)
    Hp2, Wp2, Ho2, Wo2, frame2, F2, taps2 = _geometry(Ho1, Wo1, k, p, d)
    # In-kernel flat re-layout of the inter-layer tensor needs both layers to share
    # the padded row width ('same' convolution: 2*padding == dilation*(kernel-1)).
    assert Wp2 == Wp1, "fused layout requires 2*padding == dilation*(kernel_size-1)"
    lead2 = p * Wp2 + p                               # zero lead before the a1 slab
    a1_off = _round_up(lead2, 128)                    # store slab at aligned lanes
    x2_len = a1_off - lead2 + F2                      # layer-2 flat buffer length
    taps2 = tuple(a1_off - lead2 + off for off in taps2)

    Cin_pad = _round_up(Cin, 8)
    C1_pad = _round_up(C1, 8)

    # Layer-1 input: pad channels to a sublane multiple, pad spatially, flatten HxW,
    # extend with the few zero tail columns every tap window needs.  No im2col.
    xp = jnp.pad(x_nchw, ((0, 0), (0, Cin_pad - Cin), (p, p), (p, p)))
    xf = xp.reshape(N, Cin_pad, Hp1 * Wp1)
    xf = jnp.pad(xf, ((0, 0), (0, 0), (0, F1 - Hp1 * Wp1))).astype(jnp.float32)

    w1_2d = _weight_2d(w1, Cin_pad)                   # [C1, T*Cin_pad]
    w2_2d = _weight_2d(w2, C1_pad)                    # [C2, T*C1_pad]

    # Valid-column masks over the flat conv frames (cols >= Wo of each padded row are
    # wrap-around garbage).  Tiny (~1 KB) inputs; kept as arrays rather than in-kernel
    # iota%Wp so the kernel stays on well-supported vector ops.
    mask1 = ((jnp.arange(frame1) % Wp1) < Wo1).astype(jnp.float32).reshape(1, frame1)
    mask2 = ((jnp.arange(frame2) % Wp2) < Wo2).astype(jnp.float32).reshape(1, frame2)

    g1 = params["bn1_gamma"].reshape(-1, 1).astype(jnp.float32)
    b1 = params["bn1_beta"].reshape(-1, 1).astype(jnp.float32)
    g2 = params["bn2_gamma"].reshape(-1, 1).astype(jnp.float32)
    b2 = params["bn2_beta"].reshape(-1, 1).astype(jnp.float32)

    kernel = functools.partial(
        _bn_block_kernel,
        n_batch=N,
        taps1=taps1, frame1=frame1, inv_count1=1.0 / (N * Ho1 * Wo1),
        taps2=taps2, frame2=frame2, inv_count2=1.0 / (N * Ho2 * Wo2),
        a1_off=a1_off)

    y = pl.pallas_call(
        kernel,
        out_shape=jax.ShapeDtypeStruct((N, C2, frame2), jnp.float32),
        grid_spec=pltpu.PrefetchScalarGridSpec(
            num_scalar_prefetch=0,
            grid=(1,),
            in_specs=[pl.BlockSpec((N, Cin_pad, F1), lambda i: (0, 0, 0)),
                      pl.BlockSpec((C1, T * Cin_pad), lambda i: (0, 0)),
                      pl.BlockSpec((C2, T * C1_pad), lambda i: (0, 0)),
                      pl.BlockSpec((C1, 1), lambda i: (0, 0)),
                      pl.BlockSpec((C1, 1), lambda i: (0, 0)),
                      pl.BlockSpec((C2, 1), lambda i: (0, 0)),
                      pl.BlockSpec((C2, 1), lambda i: (0, 0)),
                      pl.BlockSpec((1, frame1), lambda i: (0, 0)),
                      pl.BlockSpec((1, frame2), lambda i: (0, 0))],
            out_specs=pl.BlockSpec((N, C2, frame2), lambda i: (0, 0, 0)),
            scratch_shapes=[pltpu.VMEM((T * Cin_pad, frame1), jnp.float32),
                            pltpu.VMEM((C1_pad, x2_len), jnp.float32),
                            pltpu.VMEM((T * C1_pad, frame2), jnp.float32)]),
        compiler_params=pltpu.CompilerParams(
            # TODO(synk): for larger N on v7x, split the batch over a 2-wide
            # 'parallel' grid (per-half partial stats + tiny combine) to use both TCs.
            dimension_semantics=("arbitrary",)),
    )(xf, w1_2d, w2_2d, g1, b1, g2, b2, mask1, mask2)

    # Single XLA slice/reshape back to NCHW on the final output only.
    return y.reshape(N, C2, Ho2, Wp2)[:, :, :, :Wo2]


# ---------------------------------------------------------------------------
# Pure-JAX reference (for correctness check)
# ---------------------------------------------------------------------------
def _ref_forward(x_nchw, params, *, kernel_size, stride, padding, dilation):
    def layer(x, w, gamma, beta):
        y = jax.lax.conv_general_dilated(
            x, w, window_strides=(stride, stride),
            padding=[(padding, padding), (padding, padding)],
            rhs_dilation=(dilation, dilation),
            dimension_numbers=("NCHW", "OIHW", "NCHW"))
        mean = jnp.mean(y, axis=(0, 2, 3), keepdims=True)
        var = jnp.mean((y - mean) ** 2, axis=(0, 2, 3), keepdims=True)
        yn = (y - mean) * jax.lax.rsqrt(var + EPS) * gamma.reshape(1, -1, 1, 1) \
             + beta.reshape(1, -1, 1, 1)
        return jnp.maximum(yn, 0.0)

    y1 = layer(x_nchw, weight_norm(params["v1"], params["g1"]),
               params["bn1_gamma"], params["bn1_beta"])
    y2 = layer(y1, weight_norm(params["v2"], params["g2"]),
               params["bn2_gamma"], params["bn2_beta"])
    return y2


# ---------------------------------------------------------------------------
# Main
# ---------------------------------------------------------------------------
if __name__ == "__main__":
    # BNBlock(n_inputs=4, n_outputs=8, n_outputs_final=8, kernel_size=3, stride=1, padding=1)
    n_inputs, n_outputs, n_outputs_final = 4, 8, 8
    kernel_size, stride, padding, dilation = 3, 1, 1, 1
    N, H, W = 2, 16, 16

    key = jax.random.PRNGKey(0)
    kx, k1, k2 = jax.random.split(key, 3)

    x = jax.random.normal(kx, (N, n_inputs, H, W), dtype=jnp.float32)

    # weight_norm params: v ~ N(0, 0.01) (per init_weights), g = ||v|| per output channel
    v1 = 0.01 * jax.random.normal(
        k1, (n_outputs, n_inputs, kernel_size, kernel_size), jnp.float32)
    v2 = 0.01 * jax.random.normal(
        k2, (n_outputs_final, n_outputs, kernel_size, kernel_size), jnp.float32)
    params = {
        "v1": v1, "g1": jnp.sqrt(jnp.sum(v1 * v1, axis=(1, 2, 3))),
        "v2": v2, "g2": jnp.sqrt(jnp.sum(v2 * v2, axis=(1, 2, 3))),
        # BatchNorm2d defaults: gamma=1, beta=0
        "bn1_gamma": jnp.ones((n_outputs,), jnp.float32),
        "bn1_beta": jnp.zeros((n_outputs,), jnp.float32),
        "bn2_gamma": jnp.ones((n_outputs_final,), jnp.float32),
        "bn2_beta": jnp.zeros((n_outputs_final,), jnp.float32),
    }

    fwd = jax.jit(functools.partial(bn_block_forward, kernel_size=kernel_size,
                                    stride=stride, padding=padding, dilation=dilation))
    out = jax.block_until_ready(fwd(x, params))

    ref = _ref_forward(x, params, kernel_size=kernel_size, stride=stride,
                       padding=padding, dilation=dilation)
    assert out.shape == (N, n_outputs_final, H, W)
    max_err = float(jnp.max(jnp.abs(out - ref)))
    assert jnp.allclose(out, ref, atol=5e-4, rtol=5e-4), max_err

    print("KERNEL_OK")
</pallas_src>

<mosaic_0001>
module attributes {stable_mosaic.version = 11 : i64} {
  func.func @_bn_block_kernel(%arg0: i32, %arg1: memref<2x8x326xf32, #tpu.memory_space<vmem>>, %arg2: memref<8x72xf32, #tpu.memory_space<vmem>>, %arg3: memref<8x72xf32, #tpu.memory_space<vmem>>, %arg4: memref<8x1xf32, #tpu.memory_space<vmem>>, %arg5: memref<8x1xf32, #tpu.memory_space<vmem>>, %arg6: memref<8x1xf32, #tpu.memory_space<vmem>>, %arg7: memref<8x1xf32, #tpu.memory_space<vmem>>, %arg8: memref<1x288xf32, #tpu.memory_space<vmem>>, %arg9: memref<1x288xf32, #tpu.memory_space<vmem>>, %arg10: memref<2x8x288xf32, #tpu.memory_space<vmem>>, %arg11: memref<72x288xf32, #tpu.memory_space<vmem>>, %arg12: memref<8x435xf32, #tpu.memory_space<vmem>>, %arg13: memref<72x288xf32, #tpu.memory_space<vmem>>) attributes {dimension_semantics = [#tpu.dimension_semantics<arbitrary>], iteration_bounds = array<i64: 1>, scalar_prefetch = 0 : i64, scratch_operands = 3 : i64, tpu.core_type = #tpu.core_type<tc>, window_params = [{pipeline_mode = #tpu.pipeline_mode<synchronous>, transform_indices = @transform_0, window_bounds = array<i64: 2, 8, 326>}, {pipeline_mode = #tpu.pipeline_mode<synchronous>, transform_indices = @transform_1, window_bounds = array<i64: 8, 72>}, {pipeline_mode = #tpu.pipeline_mode<synchronous>, transform_indices = @transform_2, window_bounds = array<i64: 8, 72>}, {pipeline_mode = #tpu.pipeline_mode<synchronous>, transform_indices = @transform_3, window_bounds = array<i64: 8, 1>}, {pipeline_mode = #tpu.pipeline_mode<synchronous>, transform_indices = @transform_4, window_bounds = array<i64: 8, 1>}, {pipeline_mode = #tpu.pipeline_mode<synchronous>, transform_indices = @transform_5, window_bounds = array<i64: 8, 1>}, {pipeline_mode = #tpu.pipeline_mode<synchronous>, transform_indices = @transform_6, window_bounds = array<i64: 8, 1>}, {pipeline_mode = #tpu.pipeline_mode<synchronous>, transform_indices = @transform_7, window_bounds = array<i64: 1, 288>}, {pipeline_mode = #tpu.pipeline_mode<synchronous>, transform_indices = @transform_8, window_bounds = array<i64: 1, 288>}, {pipeline_mode = #tpu.pipeline_mode<synchronous>, transform_indices = @transform_9, window_bounds = array<i64: 2, 8, 288>}]} {
    %c0 = arith.constant 0 : index
    %c0_0 = arith.constant 0 : index
    %0 = vector.load %arg2[%c0, %c0_0] : memref<8x72xf32, #tpu.memory_space<vmem>>, vector<8x72xf32>
    %c0_1 = arith.constant 0 : index
    %c0_2 = arith.constant 0 : index
    %1 = vector.load %arg3[%c0_1, %c0_2] : memref<8x72xf32, #tpu.memory_space<vmem>>, vector<8x72xf32>
    %c0_3 = arith.constant 0 : index
    %c0_4 = arith.constant 0 : index
    %2 = vector.load %arg8[%c0_3, %c0_4] : memref<1x288xf32, #tpu.memory_space<vmem>>, vector<1x288xf32>
    %c0_5 = arith.constant 0 : index
    %c0_6 = arith.constant 0 : index
    %3 = vector.load %arg9[%c0_5, %c0_6] : memref<1x288xf32, #tpu.memory_space<vmem>>, vector<1x288xf32>
    %cst = arith.constant 0.000000e+00 : f32
    %4 = vector.broadcast %cst : f32 to vector<8x1xf32>
    %cst_7 = arith.constant 0.000000e+00 : f32
    %5 = vector.broadcast %cst_7 : f32 to vector<8x1xf32>
    %c0_8 = arith.constant 0 : index
    %c0_9 = arith.constant 0 : index
    %c0_10 = arith.constant 0 : index
    %6 = vector.load %arg1[%c0_8, %c0_9, %c0_10] : memref<2x8x326xf32, #tpu.memory_space<vmem>>, vector<1x8x326xf32>
    %7 = vector.shape_cast %6 : vector<1x8x326xf32> to vector<8x326xf32>
    %8 = vector.extract_strided_slice %7 {offsets = [0, 0], sizes = [8, 288], strides = [1, 1]} : vector<8x326xf32> to vector<8x288xf32>
    %c0_11 = arith.constant 0 : index
    %c0_12 = arith.constant 0 : index
    %9 = vector.load %arg11[%c0_11, %c0_12] : memref<72x288xf32, #tpu.memory_space<vmem>>, vector<8x288xf32>
    tpu.vector_store %arg11[%c0_11, %c0_12], %8 {strides = array<i32>} : memref<72x288xf32, #tpu.memory_space<vmem>>, vector<8x288xf32>,
    %10 = vector.extract_strided_slice %7 {offsets = [0, 1], sizes = [8, 288], strides = [1, 1]} : vector<8x326xf32> to vector<8x288xf32>
    %c8 = arith.constant 8 : index
    %c0_13 = arith.constant 0 : index
    %11 = vector.load %arg11[%c8, %c0_13] : memref<72x288xf32, #tpu.memory_space<vmem>>, vector<8x288xf32>
    tpu.vector_store %arg11[%c8, %c0_13], %10 {strides = array<i32>} : memref<72x288xf32, #tpu.memory_space<vmem>>, vector<8x288xf32>,
    %12 = vector.extract_strided_slice %7 {offsets = [0, 2], sizes = [8, 288], strides = [1, 1]} : vector<8x326xf32> to vector<8x288xf32>
    %c16 = arith.constant 16 : index
    %c0_14 = arith.constant 0 : index
    %13 = vector.load %arg11[%c16, %c0_14] : memref<72x288xf32, #tpu.memory_space<vmem>>, vector<8x288xf32>
    tpu.vector_store %arg11[%c16, %c0_14], %12 {strides = array<i32>} : memref<72x288xf32, #tpu.memory_space<vmem>>, vector<8x288xf32>,
    %14 = vector.extract_strided_slice %7 {offsets = [0, 18], sizes = [8, 288], strides = [1, 1]} : vector<8x326xf32> to vector<8x288xf32>
    %c24 = arith.constant 24 : index
    %c0_15 = arith.constant 0 : index
    %15 = vector.load %arg11[%c24, %c0_15] : memref<72x288xf32, #tpu.memory_space<vmem>>, vector<8x288xf32>
    tpu.vector_store %arg11[%c24, %c0_15], %14 {strides = array<i32>} : memref<72x288xf32, #tpu.memory_space<vmem>>, vector<8x288xf32>,
    %16 = vector.extract_strided_slice %7 {offsets = [0, 19], sizes = [8, 288], strides = [1, 1]} : vector<8x326xf32> to vector<8x288xf32>
    %c32 = arith.constant 32 : index
    %c0_16 = arith.constant 0 : index
    %17 = vector.load %arg11[%c32, %c0_16] : memref<72x288xf32, #tpu.memory_space<vmem>>, vector<8x288xf32>
    tpu.vector_store %arg11[%c32, %c0_16], %16 {strides = array<i32>} : memref<72x288xf32, #tpu.memory_space<vmem>>, vector<8x288xf32>,
    %18 = vector.extract_strided_slice %7 {offsets = [0, 20], sizes = [8, 288], strides = [1, 1]} : vector<8x326xf32> to vector<8x288xf32>
    %c40 = arith.constant 40 : index
    %c0_17 = arith.constant 0 : index
    %19 = vector.load %arg11[%c40, %c0_17] : memref<72x288xf32, #tpu.memory_space<vmem>>, vector<8x288xf32>
    tpu.vector_store %arg11[%c40, %c0_17], %18 {strides = array<i32>} : memref<72x288xf32, #tpu.memory_space<vmem>>, vector<8x288xf32>,
    %20 = vector.extract_strided_slice %7 {offsets = [0, 36], sizes = [8, 288], strides = [1, 1]} : vector<8x326xf32> to vector<8x288xf32>
    %c48 = arith.constant 48 : index
    %c0_18 = arith.constant 0 : index
    %21 = vector.load %arg11[%c48, %c0_18] : memref<72x288xf32, #tpu.memory_space<vmem>>, vector<8x288xf32>
    tpu.vector_store %arg11[%c48, %c0_18], %20 {strides = array<i32>} : memref<72x288xf32, #tpu.memory_space<vmem>>, vector<8x288xf32>,
    %22 = vector.extract_strided_slice %7 {offsets = [0, 37], sizes = [8, 288], strides = [1, 1]} : vector<8x326xf32> to vector<8x288xf32>
    %c56 = arith.constant 56 : index
    %c0_19 = arith.constant 0 : index
    %23 = vector.load %arg11[%c56, %c0_19] : memref<72x288xf32, #tpu.memory_space<vmem>>, vector<8x288xf32>
    tpu.vector_store %arg11[%c56, %c0_19], %22 {strides = array<i32>} : memref<72x288xf32, #tpu.memory_space<vmem>>, vector<8x288xf32>,
    %24 = vector.extract_strided_slice %7 {offsets = [0, 38], sizes = [8, 288], strides = [1, 1]} : vector<8x326xf32> to vector<8x288xf32>
    %c64 = arith.constant 64 : index
    %c0_20 = arith.constant 0 : index
    %25 = vector.load %arg11[%c64, %c0_20] : memref<72x288xf32, #tpu.memory_space<vmem>>, vector<8x288xf32>
    tpu.vector_store %arg11[%c64, %c0_20], %24 {strides = array<i32>} : memref<72x288xf32, #tpu.memory_space<vmem>>, vector<8x288xf32>,
    %c0_21 = arith.constant 0 : index
    %c0_22 = arith.constant 0 : index
    %26 = vector.load %arg11[%c0_21, %c0_22] : memref<72x288xf32, #tpu.memory_space<vmem>>, vector<72x288xf32>
    %cst_23 = arith.constant dense<0.000000e+00> : vector<8x288xf32>
    %27 = tpu.matmul %0, %26, %cst_23 {dimension_numbers = #tpu.dot_dimension_numbers<[1], [0], [0], [1], [0, 0, 1, 1], [], []>} : vector<8x72xf32>, vector<72x288xf32>, vector<8x288xf32> -> vector<8x288xf32>
    %28 = vector.broadcast %2 : vector<1x288xf32> to vector<8x288xf32>
    %29 = arith.mulf %27, %28 : vector<8x288xf32>
    %cst_24 = arith.constant dense<0.000000e+00> : vector<8xf32>
    %30 = vector.multi_reduction <add>, %29, %cst_24 [1] : vector<8x288xf32> to vector<8xf32>
    %31 = vector.shape_cast %30 : vector<8xf32> to vector<8x1xf32>
    %32 = arith.addf %4, %31 : vector<8x1xf32>
    %33 = arith.mulf %29, %29 : vector<8x288xf32>
    %cst_25 = arith.constant dense<0.000000e+00> : vector<8xf32>
    %34 = vector.multi_reduction <add>, %33, %cst_25 [1] : vector<8x288xf32> to vector<8xf32>
    %35 = vector.shape_cast %34 : vector<8xf32> to vector<8x1xf32>
    %36 = arith.addf %5, %35 : vector<8x1xf32>
    %c1 = arith.constant 1 : index
    %c0_26 = arith.constant 0 : index
    %c0_27 = arith.constant 0 : index
    %37 = vector.load %arg1[%c1, %c0_26, %c0_27] : memref<2x8x326xf32, #tpu.memory_space<vmem>>, vector<1x8x326xf32>
    %38 = vector.shape_cast %37 : vector<1x8x326xf32> to vector<8x326xf32>
    %39 = vector.extract_strided_slice %38 {offsets = [0, 0], sizes = [8, 288], strides = [1, 1]} : vector<8x326xf32> to vector<8x288xf32>
    %c0_28 = arith.constant 0 : index
    %c0_29 = arith.constant 0 : index
    %40 = vector.load %arg11[%c0_28, %c0_29] : memref<72x288xf32, #tpu.memory_space<vmem>>, vector<8x288xf32>
    tpu.vector_store %arg11[%c0_28, %c0_29], %39 {strides = array<i32>} : memref<72x288xf32, #tpu.memory_space<vmem>>, vector<8x288xf32>,
    %41 = vector.extract_strided_slice %38 {offsets = [0, 1], sizes = [8, 288], strides = [1, 1]} : vector<8x326xf32> to vector<8x288xf32>
    %c8_30 = arith.constant 8 : index
    %c0_31 = arith.constant 0 : index
    %42 = vector.load %arg11[%c8_30, %c0_31] : memref<72x288xf32, #tpu.memory_space<vmem>>, vector<8x288xf32>
    tpu.vector_store %arg11[%c8_30, %c0_31], %41 {strides = array<i32>} : memref<72x288xf32, #tpu.memory_space<vmem>>, vector<8x288xf32>,
    %43 = vector.extract_strided_slice %38 {offsets = [0, 2], sizes = [8, 288], strides = [1, 1]} : vector<8x326xf32> to vector<8x288xf32>
    %c16_32 = arith.constant 16 : index
    %c0_33 = arith.constant 0 : index
    %44 = vector.load %arg11[%c16_32, %c0_33] : memref<72x288xf32, #tpu.memory_space<vmem>>, vector<8x288xf32>
    tpu.vector_store %arg11[%c16_32, %c0_33], %43 {strides = array<i32>} : memref<72x288xf32, #tpu.memory_space<vmem>>, vector<8x288xf32>,
    %45 = vector.extract_strided_slice %38 {offsets = [0, 18], sizes = [8, 288], strides = [1, 1]} : vector<8x326xf32> to vector<8x288xf32>
    %c24_34 = arith.constant 24 : index
    %c0_35 = arith.constant 0 : index
    %46 = vector.load %arg11[%c24_34, %c0_35] : memref<72x288xf32, #tpu.memory_space<vmem>>, vector<8x288xf32>
    tpu.vector_store %arg11[%c24_34, %c0_35], %45 {strides = array<i32>} : memref<72x288xf32, #tpu.memory_space<vmem>>, vector<8x288xf32>,
    %47 = vector.extract_strided_slice %38 {offsets = [0, 19], sizes = [8, 288], strides = [1, 1]} : vector<8x326xf32> to vector<8x288xf32>
    %c32_36 = arith.constant 32 : index
    %c0_37 = arith.constant 0 : index
    %48 = vector.load %arg11[%c32_36, %c0_37] : memref<72x288xf32, #tpu.memory_space<vmem>>, vector<8x288xf32>
    tpu.vector_store %arg11[%c32_36, %c0_37], %47 {strides = array<i32>} : memref<72x288xf32, #tpu.memory_space<vmem>>, vector<8x288xf32>,
    %49 = vector.extract_strided_slice %38 {offsets = [0, 20], sizes = [8, 288], strides = [1, 1]} : vector<8x326xf32> to vector<8x288xf32>
    %c40_38 = arith.constant 40 : index
    %c0_39 = arith.constant 0 : index
    %50 = vector.load %arg11[%c40_38, %c0_39] : memref<72x288xf32, #tpu.memory_space<vmem>>, vector<8x288xf32>
    tpu.vector_store %arg11[%c40_38, %c0_39], %49 {strides = array<i32>} : memref<72x288xf32, #tpu.memory_space<vmem>>, vector<8x288xf32>,
    %51 = vector.extract_strided_slice %38 {offsets = [0, 36], sizes = [8, 288], strides = [1, 1]} : vector<8x326xf32> to vector<8x288xf32>
    %c48_40 = arith.constant 48 : index
    %c0_41 = arith.constant 0 : index
    %52 = vector.load %arg11[%c48_40, %c0_41] : memref<72x288xf32, #tpu.memory_space<vmem>>, vector<8x288xf32>
    tpu.vector_store %arg11[%c48_40, %c0_41], %51 {strides = array<i32>} : memref<72x288xf32, #tpu.memory_space<vmem>>, vector<8x288xf32>,
    %53 = vector.extract_strided_slice %38 {offsets = [0, 37], sizes = [8, 288], strides = [1, 1]} : vector<8x326xf32> to vector<8x288xf32>
    %c56_42 = arith.constant 56 : index
    %c0_43 = arith.constant 0 : index
    %54 = vector.load %arg11[%c56_42, %c0_43] : memref<72x288xf32, #tpu.memory_space<vmem>>, vector<8x288xf32>
    tpu.vector_store %arg11[%c56_42, %c0_43], %53 {strides = array<i32>} : memref<72x288xf32, #tpu.memory_space<vmem>>, vector<8x288xf32>,
    %55 = vector.extract_strided_slice %38 {offsets = [0, 38], sizes = [8, 288], strides = [1, 1]} : vector<8x326xf32> to vector<8x288xf32>
    %c64_44 = arith.constant 64 : index
    %c0_45 = arith.constant 0 : index
    %56 = vector.load %arg11[%c64_44, %c0_45] : memref<72x288xf32, #tpu.memory_space<vmem>>, vector<8x288xf32>
    tpu.vector_store %arg11[%c64_44, %c0_45], %55 {strides = array<i32>} : memref<72x288xf32, #tpu.memory_space<vmem>>, vector<8x288xf32>,
    %c0_46 = arith.constant 0 : index
    %c0_47 = arith.constant 0 : index
    %57 = vector.load %arg11[%c0_46, %c0_47] : memref<72x288xf32, #tpu.memory_space<vmem>>, vector<72x288xf32>
    %cst_48 = arith.constant dense<0.000000e+00> : vector<8x288xf32>
    %58 = tpu.matmul %0, %57, %cst_48 {dimension_numbers = #tpu.dot_dimension_numbers<[1], [0], [0], [1], [0, 0, 1, 1], [], []>} : vector<8x72xf32>, vector<72x288xf32>, vector<8x288xf32> -> vector<8x288xf32>
    %59 = vector.broadcast %2 : vector<1x288xf32> to vector<8x288xf32>
    %60 = arith.mulf %58, %59 : vector<8x288xf32>
    %cst_49 = arith.constant dense<0.000000e+00> : vector<8xf32>
    %61 = vector.multi_reduction <add>, %60, %cst_49 [1] : vector<8x288xf32> to vector<8xf32>
    %62 = vector.shape_cast %61 : vector<8xf32> to vector<8x1xf32>
    %63 = arith.addf %32, %62 : vector<8x1xf32>
    %64 = arith.mulf %60, %60 : vector<8x288xf32>
    %cst_50 = arith.constant dense<0.000000e+00> : vector<8xf32>
    %65 = vector.multi_reduction <add>, %64, %cst_50 [1] : vector<8x288xf32> to vector<8xf32>
    %66 = vector.shape_cast %65 : vector<8xf32> to vector<8x1xf32>
    %67 = arith.addf %36, %66 : vector<8x1xf32>
    %cst_51 = arith.constant 0.001953125 : f32
    %68 = vector.broadcast %cst_51 : f32 to vector<8x1xf32>
    %69 = arith.mulf %63, %68 : vector<8x1xf32>
    %cst_52 = arith.constant 0.001953125 : f32
    %70 = vector.broadcast %cst_52 : f32 to vector<8x1xf32>
    %71 = arith.mulf %67, %70 : vector<8x1xf32>
    %72 = arith.mulf %69, %69 : vector<8x1xf32>
    %73 = arith.subf %71, %72 : vector<8x1xf32>
    %cst_53 = arith.constant 0.000000e+00 : f32
    %74 = vector.broadcast %cst_53 : f32 to vector<8x1xf32>
    %75 = arith.maximumf %73, %74 : vector<8x1xf32>
    %c0_54 = arith.constant 0 : index
    %c0_55 = arith.constant 0 : index
    %76 = vector.load %arg4[%c0_54, %c0_55] : memref<8x1xf32, #tpu.memory_space<vmem>>, vector<8x1xf32>
    %cst_56 = arith.constant 9.99999974E-6 : f32
    %77 = vector.broadcast %cst_56 : f32 to vector<8x1xf32>
    %78 = arith.addf %75, %77 : vector<8x1xf32>
    %79 = math.rsqrt %78 : vector<8x1xf32>
    %80 = arith.mulf %76, %79 : vector<8x1xf32>
    %c0_57 = arith.constant 0 : index
    %c0_58 = arith.constant 0 : index
    %81 = vector.load %arg5[%c0_57, %c0_58] : memref<8x1xf32, #tpu.memory_space<vmem>>, vector<8x1xf32>
    %82 = arith.mulf %69, %80 : vector<8x1xf32>
    %83 = arith.subf %81, %82 : vector<8x1xf32>
    %cst_59 = arith.constant 0.000000e+00 : f32
    %84 = vector.broadcast %cst_59 : f32 to vector<8x435xf32>
    %c0_60 = arith.constant 0 : index
    %c0_61 = arith.constant 0 : index
    %85 = vector.load %arg12[%c0_60, %c0_61] : memref<8x435xf32, #tpu.memory_space<vmem>>, vector<8x435xf32>
    tpu.vector_store %arg12[%c0_60, %c0_61], %84 {strides = array<i32>} : memref<8x435xf32, #tpu.memory_space<vmem>>, vector<8x435xf32>,
    %cst_62 = arith.constant 0.000000e+00 : f32
    %86 = vector.broadcast %cst_62 : f32 to vector<8x1xf32>
    %cst_63 = arith.constant 0.000000e+00 : f32
    %87 = vector.broadcast %cst_63 : f32 to vector<8x1xf32>
    %88 = vector.broadcast %80 : vector<8x1xf32> to vector<8x288xf32>
    %89 = arith.mulf %27, %88 : vector<8x288xf32>
    %90 = vector.broadcast %83 : vector<8x1xf32> to vector<8x288xf32>
    %91 = arith.addf %89, %90 : vector<8x288xf32>
    %cst_64 = arith.constant 0.000000e+00 : f32
    %92 = vector.broadcast %cst_64 : f32 to vector<8x288xf32>
    %93 = arith.maximumf %91, %92 : vector<8x288xf32>
    %94 = vector.broadcast %2 : vector<1x288xf32> to vector<8x288xf32>
    %95 = arith.mulf %93, %94 : vector<8x288xf32>
    %c0_65 = arith.constant 0 : index
    %c128 = arith.constant 128 : index
    %96 = vector.load %arg12[%c0_65, %c128] : memref<8x435xf32, #tpu.memory_space<vmem>>, vector<8x288xf32>
    tpu.vector_store %arg12[%c0_65, %c128], %95 {strides = array<i32>} : memref<8x435xf32, #tpu.memory_space<vmem>>, vector<8x288xf32>,
    %c0_66 = arith.constant 0 : index
    %c0_67 = arith.constant 0 : index
    %97 = vector.load %arg12[%c0_66, %c0_67] : memref<8x435xf32, #tpu.memory_space<vmem>>, vector<8x435xf32>
    %98 = vector.extract_strided_slice %97 {offsets = [0, 109], sizes = [8, 288], strides = [1, 1]} : vector<8x435xf32> to vector<8x288xf32>
    %c0_68 = arith.constant 0 : index
    %c0_69 = arith.constant 0 : index
    %99 = vector.load %arg13[%c0_68, %c0_69] : memref<72x288xf32, #tpu.memory_space<vmem>>, vector<8x288xf32>
    tpu.vector_store %arg13[%c0_68, %c0_69], %98 {strides = array<i32>} : memref<72x288xf32, #tpu.memory_space<vmem>>, vector<8x288xf32>,
    %100 = vector.extract_strided_slice %97 {offsets = [0, 110], sizes = [8, 288], strides = [1, 1]} : vector<8x435xf32> to vector<8x288xf32>
    %c8_70 = arith.constant 8 : index
    %c0_71 = arith.constant 0 : index
    %101 = vector.load %arg13[%c8_70, %c0_71] : memref<72x288xf32, #tpu.memory_space<vmem>>, vector<8x288xf32>
    tpu.vector_store %arg13[%c8_70, %c0_71], %100 {strides = array<i32>} : memref<72x288xf32, #tpu.memory_space<vmem>>, vector<8x288xf32>,
    %102 = vector.extract_strided_slice %97 {offsets = [0, 111], sizes = [8, 288], strides = [1, 1]} : vector<8x435xf32> to vector<8x288xf32>
    %c16_72 = arith.constant 16 : index
    %c0_73 = arith.constant 0 : index
    %103 = vector.load %arg13[%c16_72, %c0_73] : memref<72x288xf32, #tpu.memory_space<vmem>>, vector<8x288xf32>
    tpu.vector_store %arg13[%c16_72, %c0_73], %102 {strides = array<i32>} : memref<72x288xf32, #tpu.memory_space<vmem>>, vector<8x288xf32>,
    %104 = vector.extract_strided_slice %97 {offsets = [0, 127], sizes = [8, 288], strides = [1, 1]} : vector<8x435xf32> to vector<8x288xf32>
    %c24_74 = arith.constant 24 : index
    %c0_75 = arith.constant 0 : index
    %105 = vector.load %arg13[%c24_74, %c0_75] : memref<72x288xf32, #tpu.memory_space<vmem>>, vector<8x288xf32>
    tpu.vector_store %arg13[%c24_74, %c0_75], %104 {strides = array<i32>} : memref<72x288xf32, #tpu.memory_space<vmem>>, vector<8x288xf32>,
    %106 = vector.extract_strided_slice %97 {offsets = [0, 128], sizes = [8, 288], strides = [1, 1]} : vector<8x435xf32> to vector<8x288xf32>
    %c32_76 = arith.constant 32 : index
    %c0_77 = arith.constant 0 : index
    %107 = vector.load %arg13[%c32_76, %c0_77] : memref<72x288xf32, #tpu.memory_space<vmem>>, vector<8x288xf32>
    tpu.vector_store %arg13[%c32_76, %c0_77], %106 {strides = array<i32>} : memref<72x288xf32, #tpu.memory_space<vmem>>, vector<8x288xf32>,
    %108 = vector.extract_strided_slice %97 {offsets = [0, 129], sizes = [8, 288], strides = [1, 1]} : vector<8x435xf32> to vector<8x288xf32>
    %c40_78 = arith.constant 40 : index
    %c0_79 = arith.constant 0 : index
    %109 = vector.load %arg13[%c40_78, %c0_79] : memref<72x288xf32, #tpu.memory_space<vmem>>, vector<8x288xf32>
    tpu.vector_store %arg13[%c40_78, %c0_79], %108 {strides = array<i32>} : memref<72x288xf32, #tpu.memory_space<vmem>>, vector<8x288xf32>,
    %110 = vector.extract_strided_slice %97 {offsets = [0, 145], sizes = [8, 288], strides = [1, 1]} : vector<8x435xf32> to vector<8x288xf32>
    %c48_80 = arith.constant 48 : index
    %c0_81 = arith.constant 0 : index
    %111 = vector.load %arg13[%c48_80, %c0_81] : memref<72x288xf32, #tpu.memory_space<vmem>>, vector<8x288xf32>
    tpu.vector_store %arg13[%c48_80, %c0_81], %110 {strides = array<i32>} : memref<72x288xf32, #tpu.memory_space<vmem>>, vector<8x288xf32>,
    %112 = vector.extract_strided_slice %97 {offsets = [0, 146], sizes = [8, 288], strides = [1, 1]} : vector<8x435xf32> to vector<8x288xf32>
    %c56_82 = arith.constant 56 : index
    %c0_83 = arith.constant 0 : index
    %113 = vector.load %arg13[%c56_82, %c0_83] : memref<72x288xf32, #tpu.memory_space<vmem>>, vector<8x288xf32>
    tpu.vector_store %arg13[%c56_82, %c0_83], %112 {strides = array<i32>} : memref<72x288xf32, #tpu.memory_space<vmem>>, vector<8x288xf32>,
    %114 = vector.extract_strided_slice %97 {offsets = [0, 147], sizes = [8, 288], strides = [1, 1]} : vector<8x435xf32> to vector<8x288xf32>
    %c64_84 = arith.constant 64 : index
    %c0_85 = arith.constant 0 : index
    %115 = vector.load %arg13[%c64_84, %c0_85] : memref<72x288xf32, #tpu.memory_space<vmem>>, vector<8x288xf32>
    tpu.vector_store %arg13[%c64_84, %c0_85], %114 {strides = array<i32>} : memref<72x288xf32, #tpu.memory_space<vmem>>, vector<8x288xf32>,
    %c0_86 = arith.constant 0 : index
    %c0_87 = arith.constant 0 : index
    %116 = vector.load %arg13[%c0_86, %c0_87] : memref<72x288xf32, #tpu.memory_space<vmem>>, vector<72x288xf32>
    %cst_88 = arith.constant dense<0.000000e+00> : vector<8x288xf32>
    %117 = tpu.matmul %1, %116, %cst_88 {dimension_numbers = #tpu.dot_dimension_numbers<[1], [0], [0], [1], [0, 0, 1, 1], [], []>} : vector<8x72xf32>, vector<72x288xf32>, vector<8x288xf32> -> vector<8x288xf32>
    %118 = vector.broadcast %3 : vector<1x288xf32> to vector<8x288xf32>
    %119 = arith.mulf %117, %118 : vector<8x288xf32>
    %cst_89 = arith.constant dense<0.000000e+00> : vector<8xf32>
    %120 = vector.multi_reduction <add>, %119, %cst_89 [1] : vector<8x288xf32> to vector<8xf32>
    %121 = vector.shape_cast %120 : vector<8xf32> to vector<8x1xf32>
    %122 = arith.addf %86, %121 : vector<8x1xf32>
    %123 = arith.mulf %119, %119 : vector<8x288xf32>
    %cst_90 = arith.constant dense<0.000000e+00> : vector<8xf32>
    %124 = vector.multi_reduction <add>, %123, %cst_90 [1] : vector<8x288xf32> to vector<8xf32>
    %125 = vector.shape_cast %124 : vector<8xf32> to vector<8x1xf32>
    %126 = arith.addf %87, %125 : vector<8x1xf32>
    %127 = vector.broadcast %80 : vector<8x1xf32> to vector<8x288xf32>
    %128 = arith.mulf %58, %127 : vector<8x288xf32>
    %129 = vector.broadcast %83 : vector<8x1xf32> to vector<8x288xf32>
    %130 = arith.addf %128, %129 : vector<8x288xf32>
    %cst_91 = arith.constant 0.000000e+00 : f32
    %131 = vector.broadcast %cst_91 : f32 to vector<8x288xf32>
    %132 = arith.maximumf %130, %131 : vector<8x288xf32>
    %133 = vector.broadcast %2 : vector<1x288xf32> to vector<8x288xf32>
    %134 = arith.mulf %132, %133 : vector<8x288xf32>
    %c0_92 = arith.constant 0 : index
    %c128_93 = arith.constant 128 : index
    %135 = vector.load %arg12[%c0_92, %c128_93] : memref<8x435xf32, #tpu.memory_space<vmem>>, vector<8x288xf32>
    tpu.vector_store %arg12[%c0_92, %c128_93], %134 {strides = array<i32>} : memref<8x435xf32, #tpu.memory_space<vmem>>, vector<8x288xf32>,
    %c0_94 = arith.constant 0 : index
    %c0_95 = arith.constant 0 : index
    %136 = vector.load %arg12[%c0_94, %c0_95] : memref<8x435xf32, #tpu.memory_space<vmem>>, vector<8x435xf32>
    %137 = vector.extract_strided_slice %136 {offsets = [0, 109], sizes = [8, 288], strides = [1, 1]} : vector<8x435xf32> to vector<8x288xf32>
    %c0_96 = arith.constant 0 : index
    %c0_97 = arith.constant 0 : index
    %138 = vector.load %arg13[%c0_96, %c0_97] : memref<72x288xf32, #tpu.memory_space<vmem>>, vector<8x288xf32>
    tpu.vector_store %arg13[%c0_96, %c0_97], %137 {strides = array<i32>} : memref<72x288xf32, #tpu.memory_space<vmem>>, vector<8x288xf32>,
    %139 = vector.extract_strided_slice %136 {offsets = [0, 110], sizes = [8, 288], strides = [1, 1]} : vector<8x435xf32> to vector<8x288xf32>
    %c8_98 = arith.constant 8 : index
    %c0_99 = arith.constant 0 : index
    %140 = vector.load %arg13[%c8_98, %c0_99] : memref<72x288xf32, #tpu.memory_space<vmem>>, vector<8x288xf32>
    tpu.vector_store %arg13[%c8_98, %c0_99], %139 {strides = array<i32>} : memref<72x288xf32, #tpu.memory_space<vmem>>, vector<8x288xf32>,
    %141 = vector.extract_strided_slice %136 {offsets = [0, 111], sizes = [8, 288], strides = [1, 1]} : vector<8x435xf32> to vector<8x288xf32>
    %c16_100 = arith.constant 16 : index
    %c0_101 = arith.constant 0 : index
    %142 = vector.load %arg13[%c16_100, %c0_101] : memref<72x288xf32, #tpu.memory_space<vmem>>, vector<8x288xf32>
    tpu.vector_store %arg13[%c16_100, %c0_101], %141 {strides = array<i32>} : memref<72x288xf32, #tpu.memory_space<vmem>>, vector<8x288xf32>,
    %143 = vector.extract_strided_slice %136 {offsets = [0, 127], sizes = [8, 288], strides = [1, 1]} : vector<8x435xf32> to vector<8x288xf32>
    %c24_102 = arith.constant 24 : index
    %c0_103 = arith.constant 0 : index
    %144 = vector.load %arg13[%c24_102, %c0_103] : memref<72x288xf32, #tpu.memory_space<vmem>>, vector<8x288xf32>
    tpu.vector_store %arg13[%c24_102, %c0_103], %143 {strides = array<i32>} : memref<72x288xf32, #tpu.memory_space<vmem>>, vector<8x288xf32>,
    %145 = vector.extract_strided_slice %136 {offsets = [0, 128], sizes = [8, 288], strides = [1, 1]} : vector<8x435xf32> to vector<8x288xf32>
    %c32_104 = arith.constant 32 : index
    %c0_105 = arith.constant 0 : index
    %146 = vector.load %arg13[%c32_104, %c0_105] : memref<72x288xf32, #tpu.memory_space<vmem>>, vector<8x288xf32>
    tpu.vector_store %arg13[%c32_104, %c0_105], %145 {strides = array<i32>} : memref<72x288xf32, #tpu.memory_space<vmem>>, vector<8x288xf32>,
    %147 = vector.extract_strided_slice %136 {offsets = [0, 129], sizes = [8, 288], strides = [1, 1]} : vector<8x435xf32> to vector<8x288xf32>
    %c40_106 = arith.constant 40 : index
    %c0_107 = arith.constant 0 : index
    %148 = vector.load %arg13[%c40_106, %c0_107] : memref<72x288xf32, #tpu.memory_space<vmem>>, vector<8x288xf32>
    tpu.vector_store %arg13[%c40_106, %c0_107], %147 {strides = array<i32>} : memref<72x288xf32, #tpu.memory_space<vmem>>, vector<8x288xf32>,
    %149 = vector.extract_strided_slice %136 {offsets = [0, 145], sizes = [8, 288], strides = [1, 1]} : vector<8x435xf32> to vector<8x288xf32>
    %c48_108 = arith.constant 48 : index
    %c0_109 = arith.constant 0 : index
    %150 = vector.load %arg13[%c48_108, %c0_109] : memref<72x288xf32, #tpu.memory_space<vmem>>, vector<8x288xf32>
    tpu.vector_store %arg13[%c48_108, %c0_109], %149 {strides = array<i32>} : memref<72x288xf32, #tpu.memory_space<vmem>>, vector<8x288xf32>,
    %151 = vector.extract_strided_slice %136 {offsets = [0, 146], sizes = [8, 288], strides = [1, 1]} : vector<8x435xf32> to vector<8x288xf32>
    %c56_110 = arith.constant 56 : index
    %c0_111 = arith.constant 0 : index
    %152 = vector.load %arg13[%c56_110, %c0_111] : memref<72x288xf32, #tpu.memory_space<vmem>>, vector<8x288xf32>
    tpu.vector_store %arg13[%c56_110, %c0_111], %151 {strides = array<i32>} : memref<72x288xf32, #tpu.memory_space<vmem>>, vector<8x288xf32>,
    %153 = vector.extract_strided_slice %136 {offsets = [0, 147], sizes = [8, 288], strides = [1, 1]} : vector<8x435xf32> to vector<8x288xf32>
    %c64_112 = arith.constant 64 : index
    %c0_113 = arith.constant 0 : index
    %154 = vector.load %arg13[%c64_112, %c0_113] : memref<72x288xf32, #tpu.memory_space<vmem>>, vector<8x288xf32>
    tpu.vector_store %arg13[%c64_112, %c0_113], %153 {strides = array<i32>} : memref<72x288xf32, #tpu.memory_space<vmem>>, vector<8x288xf32>,
    %c0_114 = arith.constant 0 : index
    %c0_115 = arith.constant 0 : index
    %155 = vector.load %arg13[%c0_114, %c0_115] : memref<72x288xf32, #tpu.memory_space<vmem>>, vector<72x288xf32>
    %cst_116 = arith.constant dense<0.000000e+00> : vector<8x288xf32>
    %156 = tpu.matmul %1, %155, %cst_116 {dimension_numbers = #tpu.dot_dimension_numbers<[1], [0], [0], [1], [0, 0, 1, 1], [], []>} : vector<8x72xf32>, vector<72x288xf32>, vector<8x288xf32> -> vector<8x288xf32>
    %157 = vector.broadcast %3 : vector<1x288xf32> to vector<8x288xf32>
    %158 = arith.mulf %156, %157 : vector<8x288xf32>
    %cst_117 = arith.constant dense<0.000000e+00> : vector<8xf32>
    %159 = vector.multi_reduction <add>, %158, %cst_117 [1] : vector<8x288xf32> to vector<8xf32>
    %160 = vector.shape_cast %159 : vector<8xf32> to vector<8x1xf32>
    %161 = arith.addf %122, %160 : vector<8x1xf32>
    %162 = arith.mulf %158, %158 : vector<8x288xf32>
    %cst_118 = arith.constant dense<0.000000e+00> : vector<8xf32>
    %163 = vector.multi_reduction <add>, %162, %cst_118 [1] : vector<8x288xf32> to vector<8xf32>
    %164 = vector.shape_cast %163 : vector<8xf32> to vector<8x1xf32>
    %165 = arith.addf %126, %164 : vector<8x1xf32>
    %cst_119 = arith.constant 0.001953125 : f32
    %166 = vector.broadcast %cst_119 : f32 to vector<8x1xf32>
    %167 = arith.mulf %161, %166 : vector<8x1xf32>
    %cst_120 = arith.constant 0.001953125 : f32
    %168 = vector.broadcast %cst_120 : f32 to vector<8x1xf32>
    %169 = arith.mulf %165, %168 : vector<8x1xf32>
    %170 = arith.mulf %167, %167 : vector<8x1xf32>
    %171 = arith.subf %169, %170 : vector<8x1xf32>
    %cst_121 = arith.constant 0.000000e+00 : f32
    %172 = vector.broadcast %cst_121 : f32 to vector<8x1xf32>
    %173 = arith.maximumf %171, %172 : vector<8x1xf32>
    %c0_122 = arith.constant 0 : index
    %c0_123 = arith.constant 0 : index
    %174 = vector.load %arg6[%c0_122, %c0_123] : memref<8x1xf32, #tpu.memory_space<vmem>>, vector<8x1xf32>
    %cst_124 = arith.constant 9.99999974E-6 : f32
    %175 = vector.broadcast %cst_124 : f32 to vector<8x1xf32>
    %176 = arith.addf %173, %175 : vector<8x1xf32>
    %177 = math.rsqrt %176 : vector<8x1xf32>
    %178 = arith.mulf %174, %177 : vector<8x1xf32>
    %c0_125 = arith.constant 0 : index
    %c0_126 = arith.constant 0 : index
    %179 = vector.load %arg7[%c0_125, %c0_126] : memref<8x1xf32, #tpu.memory_space<vmem>>, vector<8x1xf32>
    %180 = arith.mulf %167, %178 : vector<8x1xf32>
    %181 = arith.subf %179, %180 : vector<8x1xf32>
    %182 = vector.broadcast %178 : vector<8x1xf32> to vector<8x288xf32>
    %183 = arith.mulf %117, %182 : vector<8x288xf32>
    %184 = vector.broadcast %181 : vector<8x1xf32> to vector<8x288xf32>
    %185 = arith.addf %183, %184 : vector<8x288xf32>
    %cst_127 = arith.constant 0.000000e+00 : f32
    %186 = vector.broadcast %cst_127 : f32 to vector<8x288xf32>
    %187 = arith.maximumf %185, %186 : vector<8x288xf32>
    %c0_128 = arith.constant 0 : index
    %c0_129 = arith.constant 0 : index
    %c0_130 = arith.constant 0 : index
    %188 = vector.load %arg10[%c0_128, %c0_129, %c0_130] : memref<2x8x288xf32, #tpu.memory_space<vmem>>, vector<1x8x288xf32>
    %189 = vector.shape_cast %188 : vector<1x8x288xf32> to vector<8x288xf32>
    %190 = vector.shape_cast %187 : vector<8x288xf32> to vector<1x8x288xf32>
    tpu.vector_store %arg10[%c0_128, %c0_129, %c0_130], %190 {strides = array<i32>} : memref<2x8x288xf32, #tpu.memory_space<vmem>>, vector<1x8x288xf32>,
    %191 = vector.broadcast %178 : vector<8x1xf32> to vector<8x288xf32>
    %192 = arith.mulf %156, %191 : vector<8x288xf32>
    %193 = vector.broadcast %181 : vector<8x1xf32> to vector<8x288xf32>
    %194 = arith.addf %192, %193 : vector<8x288xf32>
    %cst_131 = arith.constant 0.000000e+00 : f32
    %195 = vector.broadcast %cst_131 : f32 to vector<8x288xf32>
    %196 = arith.maximumf %194, %195 : vector<8x288xf32>
    %c1_132 = arith.constant 1 : index
    %c0_133 = arith.constant 0 : index
    %c0_134 = arith.constant 0 : index
    %197 = vector.load %arg10[%c1_132, %c0_133, %c0_134] : memref<2x8x288xf32, #tpu.memory_space<vmem>>, vector<1x8x288xf32>
    %198 = vector.shape_cast %197 : vector<1x8x288xf32> to vector<8x288xf32>
    %199 = vector.shape_cast %196 : vector<8x288xf32> to vector<1x8x288xf32>
    tpu.vector_store %arg10[%c1_132, %c0_133, %c0_134], %199 {strides = array<i32>} : memref<2x8x288xf32, #tpu.memory_space<vmem>>, vector<1x8x288xf32>,
    return
  }
  func.func @transform_0(%arg0: i32) -> (i32, i32, i32) {
    %c0_i32 = arith.constant 0 : i32
    %c0_i32_0 = arith.constant 0 : i32
    %c0_i32_1 = arith.constant 0 : i32
    %c0_i32_2 = arith.constant 0 : i32
    return %c0_i32, %c0_i32_0, %c0_i32_1 : i32, i32, i32
  }
  func.func @transform_1(%arg0: i32) -> (i32, i32) {
    %c0_i32 = arith.constant 0 : i32
    %c0_i32_0 = arith.constant 0 : i32
    %c0_i32_1 = arith.constant 0 : i32
    return %c0_i32, %c0_i32_0 : i32, i32
  }
  func.func @transform_2(%arg0: i32) -> (i32, i32) {
    %c0_i32 = arith.constant 0 : i32
    %c0_i32_0 = arith.constant 0 : i32
    %c0_i32_1 = arith.constant 0 : i32
    return %c0_i32, %c0_i32_0 : i32, i32
  }
  func.func @transform_3(%arg0: i32) -> (i32, i32) {
    %c0_i32 = arith.constant 0 : i32
    %c0_i32_0 = arith.constant 0 : i32
    %c0_i32_1 = arith.constant 0 : i32
    return %c0_i32, %c0_i32_0 : i32, i32
  }
  func.func @transform_4(%arg0: i32) -> (i32, i32) {
    %c0_i32 = arith.constant 0 : i32
    %c0_i32_0 = arith.constant 0 : i32
    %c0_i32_1 = arith.constant 0 : i32
    return %c0_i32, %c0_i32_0 : i32, i32
  }
  func.func @transform_5(%arg0: i32) -> (i32, i32) {
    %c0_i32 = arith.constant 0 : i32
    %c0_i32_0 = arith.constant 0 : i32
    %c0_i32_1 = arith.constant 0 : i32
    return %c0_i32, %c0_i32_0 : i32, i32
  }
  func.func @transform_6(%arg0: i32) -> (i32, i32) {
    %c0_i32 = arith.constant 0 : i32
    %c0_i32_0 = arith.constant 0 : i32
    %c0_i32_1 = arith.constant 0 : i32
    return %c0_i32, %c0_i32_0 : i32, i32
  }
  func.func @transform_7(%arg0: i32) -> (i32, i32) {
    %c0_i32 = arith.constant 0 : i32
    %c0_i32_0 = arith.constant 0 : i32
    %c0_i32_1 = arith.constant 0 : i32
    return %c0_i32, %c0_i32_0 : i32, i32
  }
  func.func @transform_8(%arg0: i32) -> (i32, i32) {
    %c0_i32 = arith.constant 0 : i32
    %c0_i32_0 = arith.constant 0 : i32
    %c0_i32_1 = arith.constant 0 : i32
    return %c0_i32, %c0_i32_0 : i32, i32
  }
  func.func @transform_9(%arg0: i32) -> (i32, i32, i32) {
    %c0_i32 = arith.constant 0 : i32
    %c0_i32_0 = arith.constant 0 : i32
    %c0_i32_1 = arith.constant 0 : i32
    %c0_i32_2 = arith.constant 0 : i32
    return %c0_i32, %c0_i32_0, %c0_i32_1 : i32, i32, i32
  }
}

</mosaic_0001>

<bundles_post_ra>
// kernel: bn_block_forward.1
= control target key start
LH: loop header
LB: loop body
LE: loop exit
PB: predicated region body
PF: predicated region fallthrough
CT: control target
= control target key end

     0   :  { %s1170_s11 = smov 92   ;;  %s1171_s12 = smov 91   ;;  %vm41_vm0 = vcmask 261120   ;;  %vm157_vm1 = vcmask 736256   ;;  %vm142_vm2 = vcmask 744448   ;;  %vm127_vm3 = vcmask 752640   ;;  %s1738_s0 = inlined_call_operand.vmem [shape: f32[2,8,326], index: 0, kind: input, shape index: {}]   ;;  %s1739_s1 = inlined_call_operand.vmem [shape: f32[8,72], index: 1, kind: input, shape index: {}]   ;;  %s1740_s7 = inlined_call_operand.vmem [shape: f32[1,288], index: 7, kind: input, shape index: {}, may-alias: {7,8}]   ;;  %s1741_s3 = inlined_call_operand.vmem [shape: f32[8,1], index: 3, kind: input, shape index: {}]   ;;  %s1742_s4 = inlined_call_operand.vmem [shape: f32[8,1], index: 4, kind: input, shape index: {}]   ;;  %s1743_s2 = inlined_call_operand.vmem [shape: f32[8,72], index: 2, kind: input, shape index: {}]   ;;  %s1744_s8 = inlined_call_operand.vmem [shape: f32[1,288], index: 8, kind: input, shape index: {}, may-alias: {7,8}]   ;;  %s1745_s5 = inlined_call_operand.vmem [shape: f32[8,1], index: 5, kind: input, shape index: {}]   ;;  %s1746_s6 = inlined_call_operand.vmem [shape: f32[8,1], index: 6, kind: input, shape index: {}]   ;;  %s1747_s9 = inlined_call_operand.vmem [shape: f32[2,8,288], index: 9, kind: output, shape index: {}]  }
   0x1   :  { %v1238_v0 = vld [vmem:[%s1738_s0] sm:$0xff]  ;;  %v1247_v1 = vld [vmem:[%s1738_s0 + $0x18] sm:$0xff]  ;;  %s1172_s15 = smov 90   ;;  %v1259_v3 = vld [vmem:[%s1738_s0 + $0x8] sm:$0xff]  ;;  %s1173_s22 = smov 108   ;;  %vm112_vm4 = vcmask 883712  }
   0x2   :  { %121 = vrot.lane.b32.xlu2 %v1238_v0, %s1170_s11  ;;  %136 = vrot.lane.b32.xlu1 %v1238_v0, %s1171_s12  ;;  %v1254_v2 = vld [vmem:[%s1738_s0 + $0x20] sm:$0xff]  ;;  %v38_v4 = vld [vmem:[%s1738_s0 + $0x10] sm:$0xff]  ;;  %s1174_s23 = smov 109   ;;  %s1175_s24 = smov 110   ;;  %vm97_vm5 = vcmask 891904   ;;  %vm82_vm6 = vcmask 900096  }
   0x3   :  { %151 = vrot.lane.b32.xlu0 %v1238_v0, %s1172_s15  ;;  %s1176_s25 = smov 126   ;;  %s1177_s26 = smov 127   ;;  %v1310_v5 = vld [vmem:[%s1738_s0 + $0x28] sm:$0xff]  ;;  %42 = vst.msk [vmem:[#allocation2 + $0x10] sm:$0xff] %vm41_vm0, %v38_v4  ;;  %vm67_vm7 = vcmask 1031168   ;;  %vm52_vm8 = vcmask 1039360  }
   0x4   :  { %vm193_vm9 = vcmask 588800   ;;  %s1180_s30 = smov 19   ;;  %s1181_s10 = smov 17   ;;  %vm533_vm13 = vcmask 416768   ;;  %vm663_vm14 = vcmask 908288   ;;  %vm630_vm15 = vcmask 7168  }
   0xa   :  { %123 = vrot.lane.b32.xlu2 %v1259_v3, %s1170_s11  ;;  %138 = vrot.lane.b32.xlu1 %v1259_v3, %s1171_s12 }
   0xb   :  { %153 = vrot.lane.b32.xlu0 %v1259_v3, %s1172_s15 }
  0x12   :  { %155 = vrot.lane.b32.xlu2 %v38_v4, %s1172_s15  ;;  %108 = vrot.lane.b32.xlu1 %v1259_v3, %s1173_s22 }
  0x13   :  { %106 = vrot.lane.b32.xlu0 %v1238_v0, %s1173_s22 }
  0x1a   :  { %140 = vrot.lane.b32.xlu2 %v38_v4, %s1171_s12  ;;  %93 = vrot.lane.b32.xlu1 %v1259_v3, %s1174_s23 }
  0x1b   :  { %91 = vrot.lane.b32.xlu0 %v1238_v0, %s1174_s23 }
  0x22   :  { %76 = vrot.lane.b32.xlu2 %v1238_v0, %s1175_s24  ;;  %392 = vrot.lane.b32.xlu1 %v1254_v2, %s1172_s15 }
  0x23   :  { %390 = vrot.lane.b32.xlu0 %v1247_v1, %s1172_s15 }
  0x2a   :  { %376 = vrot.lane.b32.xlu2 %v1247_v1, %s1171_s12  ;;  %125 = vrot.lane.b32.xlu1 %v38_v4, %s1170_s11 }
  0x2b   :  { %78 = vrot.lane.b32.xlu0 %v1259_v3, %s1175_s24 }
  0x32   :  { %63 = vrot.lane.b32.xlu2 %v1259_v3, %s1176_s25  ;;  %61 = vrot.lane.b32.xlu1 %v1238_v0, %s1176_s25 }
  0x33   :  { %378 = vrot.lane.b32.xlu0 %v1254_v2, %s1171_s12 }
  0x3a   :  { %364 = vrot.lane.b32.xlu2 %v1254_v2, %s1170_s11  ;;  %362 = vrot.lane.b32.xlu1 %v1247_v1, %s1170_s11 }
  0x3b   :  { %110 = vrot.lane.b32.xlu0 %v38_v4, %s1173_s22 }
  0x42   :  { %95 = vrot.lane.b32.xlu2 %v38_v4, %s1174_s23  ;;  %48 = vrot.lane.b32.xlu1 %v1259_v3, %s1177_s26 }
  0x43   :  { %46 = vrot.lane.b32.xlu0 %v1238_v0, %s1177_s26 }
  0x4a   :  { %394 = vrot.lane.b32.xlu2 %v1310_v5, %s1172_s15  ;;  %350 = vrot.lane.b32.xlu1 %v1254_v2, %s1173_s22 }
  0x4b   :  { %348 = vrot.lane.b32.xlu0 %v1247_v1, %s1173_s22 }
  0x52   :  { %336 = vrot.lane.b32.xlu2 %v1254_v2, %s1174_s23  ;;  %334 = vrot.lane.b32.xlu1 %v1247_v1, %s1174_s23 }
  0x53   :  { %80 = vrot.lane.b32.xlu0 %v38_v4, %s1175_s24 }
  0x5a   :  { %320 = vrot.lane.b32.xlu2 %v1247_v1, %s1175_s24  ;;  %65 = vrot.lane.b32.xlu1 %v38_v4, %s1176_s25 }
  0x5b   :  { %380 = vrot.lane.b32.xlu0 %v1310_v5, %s1171_s12 }
  0x5c   :  { %v122_v6 = vpop.permute.xlu2 %121 }
  0x62   :  { %50 = vrot.lane.b32.xlu2 %v38_v4, %s1177_s26  ;;  %366 = vrot.lane.b32.xlu1 %v1310_v5, %s1170_s11  ;;  %s1182_s11 = smov 18  }
  0x63   :  { %322 = vrot.lane.b32.xlu0 %v1254_v2, %s1175_s24 }
  0x64   :  { %v124_v7 = vpop.permute.xlu2 %123 }
  0x65   :  { %v128_v21 = vsel %vm127_vm3, %v122_v6, %v124_v7 }
  0x6a   :  { %352 = vrot.lane.b32.xlu2 %v1310_v5, %s1173_s22  ;;  %308 = vrot.lane.b32.xlu1 %v1254_v2, %s1176_s25 }
  0x6b   :  { %306 = vrot.lane.b32.xlu0 %v1247_v1, %s1176_s25 }
  0x6c   :  { %v156_v8 = vpop.permute.xlu2 %155 }
  0x6d   :  { %165 = vst.msk [vmem:[#allocation2 + $0xd0] sm:$0xff] %vm41_vm0, %v156_v8 }
  0x72   :  { %338 = vrot.lane.b32.xlu2 %v1310_v5, %s1174_s23  ;;  %294 = vrot.lane.b32.xlu1 %v1254_v2, %s1177_s26 }
  0x73   :  { %292 = vrot.lane.b32.xlu0 %v1247_v1, %s1177_s26 }
  0x74   :  { %v141_v9 = vpop.permute.xlu2 %140  ;;  %v137_v10 = vpop.permute.xlu1 %136  ;;  %v192_v11 = vld [vmem:[#allocation2 + $0xd0] sm:$0xff] }
  0x75   :  { %150 = vst.msk [vmem:[#allocation2 + $0xb8] sm:$0xff] %vm41_vm0, %v141_v9  ;;  %v152_v12 = vpop.permute.xlu0 %151  ;;  %244 = vmatpush.msra.mxu2 %v192_v11 }
  0x7a   :  { %310 = vrot.lane.b32.xlu1 %v1310_v5, %s1176_s25  ;;  %296 = vrot.lane.b32.xlu2 %v1310_v5, %s1177_s26 }
  0x7b   :  { %324 = vrot.lane.b32.xlu0 %v1310_v5, %s1175_s24 }
  0x7c   :  { %v77_v13 = vpop.permute.xlu2 %76  ;;  %v139_v14 = vpop.permute.xlu1 %138  ;;  %v189_v15 = vld [vmem:[#allocation2 + $0xb8] sm:$0xff] }
  0x7d   :  { %v154_v16 = vpop.permute.xlu0 %153  ;;  %245 = vmatpush.msra.mxu2 %v189_v15  ;;  %v144_v17 = vsel %vm142_vm2, %v139_v14, %v141_v9  ;;  %v143_v20 = vsel %vm142_vm2, %v137_v10, %v139_v14 }
  0x7e   :  { %v158_v18 = vsel %vm157_vm1, %v152_v12, %v154_v16  ;;  %v159_v19 = vsel %vm157_vm1, %v154_v16, %v156_v8  ;;  %v1399_v16 = vld [vmem:[%s1739_s1] sm:$0xff]  ;;  %s1179_s1 = smov 1  }
  0x7f   :  { %204 = vmatpush.msra.mxu0 %v158_v18  ;;  %224 = vmatpush.msra.mxu1 %v159_v19 }
  0x81   :  { %205 = vmatpush.msra.mxu0 %v143_v20  ;;  %225 = vmatpush.msra.mxu1 %v144_v17  ;;  %v168_v17 = vld [vmem:[#allocation2 + $0x10] sm:$0xff] }
  0x82   :  { %288 = vst.msk [vmem:[#allocation2 + $0x10] sm:$0xff] %vm41_vm0, %v1310_v5 }
  0x83   :  { %206 = vmatpush.msra.mxu0 %v128_v21 }
  0x84   :  { %v377_v22 = vpop.permute.xlu2 %376  ;;  %v109_v23 = vpop.permute.xlu1 %108 }
  0x85   :  { %v107_v24 = vpop.permute.xlu0 %106 }
  0x86   :  { %v113_v25 = vsel %vm112_vm4, %v107_v24, %v109_v23 }
  0x87   :  { %207 = vmatpush.msra.mxu0 %v113_v25 }
  0x8c   :  { %v1360_v26 = vpop.permute.xlu2 %63  ;;  %v94_v27 = vpop.permute.xlu1 %93 }
  0x8d   :  { %v92_v28 = vpop.permute.xlu0 %91 }
  0x8e   :  { %v98_v29 = vsel %vm97_vm5, %v92_v28, %v94_v27 }
  0x8f   :  { %208 = vmatpush.msra.mxu0 %v98_v29 }
  0x94   :  { %v1363_v30 = vpop.permute.xlu2 %364  ;;  %v393_v31 = vpop.permute.xlu1 %392 }
  0x95   :  { %v391_v32 = vpop.permute.xlu0 %390 }
  0x96   :  { %v396_v33 = vsel %vm157_vm1, %v391_v32, %v393_v31 }
  0x97   :  { %438 = vmatpush.msra.mxu3 %v396_v33 }
  0x9c   :  { %v96_v34 = vpop.permute.xlu2 %95  ;;  %v126_v35 = vpop.permute.xlu1 %125 }
  0x9d   :  { %105 = vst.msk [vmem:[#allocation2 + $0x70] sm:$0xff] %vm41_vm0, %v96_v34  ;;  %v129_v36 = vsel %vm127_vm3, %v124_v7, %v126_v35  ;;  %v79_v37 = vpop.permute.xlu0 %78  ;;  %v99_v51 = vsel %vm97_vm5, %v94_v27, %v96_v34 }
  0x9e   :  { %135 = vst.msk [vmem:[#allocation2 + $0xa0] sm:$0xff] %vm41_vm0, %v126_v35  ;;  %v83_v38 = vsel %vm82_vm6, %v77_v13, %v79_v37  ;;  %226 = vmatpush.msra.mxu1 %v129_v36 }
  0x9f   :  { %209 = vmatpush.msra.mxu0 %v83_v38 }
  0xa4   :  { %v395_v39 = vpop.permute.xlu2 %394  ;;  %v62_v40 = vpop.permute.xlu1 %61  ;;  %v180_v57 = vld [vmem:[#allocation2 + $0x70] sm:$0xff] }
  0xa5   :  { %v397_v41 = vsel %vm157_vm1, %v393_v31, %v395_v39  ;;  %403 = vst.msk [vmem:[#allocation2 + $0xd0] sm:$0xff] %vm41_vm0, %v395_v39  ;;  %v68_v42 = vsel %vm67_vm7, %v62_v40, %v1360_v26  ;;  %v379_v43 = vpop.permute.xlu0 %378  ;;  %v186_v44 = vld [vmem:[#allocation2 + $0xa0] sm:$0xff]  ;;  %v1178_v31 = vmov 0.0   ;;  %vm612_vm1 = vcmask 138240  }
  0xa6   :  { %v382_v45 = vsel %vm142_vm2, %v377_v22, %v379_v43  ;;  %246 = vmatpush.msra.mxu2 %v186_v44  ;;  %210 = vmatpush.msra.mxu0 %v68_v42  ;;  %v406_v42 = vld [vmem:[#allocation2 + $0x10] sm:$0xff]  ;;  %534 = vst.msk [vmem:[#allocation3 + $0x18] sm:$0xff] %vm533_vm13, %v1178_v31 }
  0xa7   :  { %439 = vmatpush.msra.mxu3 %v382_v45  ;;  %622 = vrot.lane.b32.xlu0 %v1178_v31, %s1179_s1 }
  0xa8   :  { %568 = vrot.lane.b32.xlu1 %v1178_v31, %s1180_s30 }
  0xac   :  { %v337_v46 = vpop.permute.xlu2 %336  ;;  %v363_v47 = vpop.permute.xlu1 %362  ;;  %v430_v18 = vld [vmem:[#allocation2 + $0xd0] sm:$0xff] }
  0xad   :  { %v368_v48 = vsel %vm127_vm3, %v363_v47, %v1363_v30  ;;  %v111_v49 = vpop.permute.xlu0 %110 }
  0xae   :  { %v114_v50 = vsel %vm112_vm4, %v109_v23, %v111_v49  ;;  %440 = vmatpush.msra.mxu3 %v368_v48  ;;  %120 = vst.msk [vmem:[#allocation2 + $0x88] sm:$0xff] %vm41_vm0, %v111_v49 }
  0xaf   :  { %227 = vmatpush.msra.mxu1 %v114_v50  ;;  %604 = vrot.lane.b32.xlu0 %v1178_v31, %s1181_s10 }
  0xb0   :  { %889 = vrot.lane.b32.xlu1 %v1178_v31, %s1179_s1 }
  0xb1   :  { %228 = vmatpush.msra.mxu1 %v99_v51 }
  0xb4   :  { %v321_v52 = vpop.permute.xlu2 %320  ;;  %v49_v53 = vpop.permute.xlu1 %48 }
  0xb5   :  { %v47_v54 = vpop.permute.xlu0 %46  ;;  %v183_v56 = vld [vmem:[#allocation2 + $0x88] sm:$0xff] }
  0xb6   :  { %v53_v55 = vsel %vm52_vm8, %v47_v54, %v49_v53  ;;  %247 = vmatpush.msra.mxu2 %v183_v56 }
  0xb7   :  { %211 = vmatpush.msra.mxu0 %v53_v55  ;;  %586 = vrot.lane.b32.xlu0 %v1178_v31, %s1182_s11 }
  0xb8   :  { %248 = vmatpush.msra.mxu2 %v180_v57 }
  0xb9   :  { %212 = vmatpush.msra.mxu0 %v1238_v0 }
  0xba   :  { %1130 = vmatmul.msk.f32.vlgmr.msra.gmra.mxu0 %vm193_vm9, %v1399_v16 }
  0xbb   :  { %458 = vmatpush.msrb.mxu0 %v397_v41 }
  0xbc   :  { %v51_v58 = vpop.permute.xlu2 %50  ;;  %v351_v59 = vpop.permute.xlu1 %350 }
  0xbd   :  { %60 = vst.msk [vmem:[#allocation2 + $0x28] sm:$0xff] %vm41_vm0, %v51_v58  ;;  %v349_v60 = vpop.permute.xlu0 %348  ;;  %v54_v14 = vsel %vm52_vm8, %v49_v53, %v51_v58 }
  0xbe   :  { %v354_v61 = vsel %vm112_vm4, %v349_v60, %v351_v59 }
  0xbf   :  { %441 = vmatpush.msra.mxu3 %v354_v61 }
  0xc4   :  { %v353_v62 = vpop.permute.xlu2 %352  ;;  %v335_v63 = vpop.permute.xlu1 %334 }
  0xc5   :  { %v355_v4 = vsel %vm112_vm4, %v351_v59, %v353_v62  ;;  %361 = vst.msk [vmem:[#allocation2 + $0x88] sm:$0xff] %vm41_vm0, %v353_v62  ;;  %v340_v6 = vsel %vm97_vm5, %v335_v63, %v337_v46  ;;  %v81_v7 = vpop.permute.xlu0 %80 }
  0xc6   :  { %v84_v0 = vsel %vm82_vm6, %v79_v37, %v81_v7  ;;  %442 = vmatpush.msra.mxu3 %v340_v6  ;;  %90 = vst.msk [vmem:[#allocation2 + $0x58] sm:$0xff] %vm41_vm0, %v81_v7 }
  0xc7   :  { %229 = vmatpush.msra.mxu1 %v84_v0 }
  0xcc   :  { %v339_v8 = vpop.permute.xlu2 %338  ;;  %v66_v9 = vpop.permute.xlu1 %65  ;;  %v421_v27 = vld [vmem:[#allocation2 + $0x88] sm:$0xff] }
  0xcd   :  { %v341_v10 = vsel %vm97_vm5, %v337_v46, %v339_v8  ;;  %347 = vst.msk [vmem:[#allocation2 + $0x70] sm:$0xff] %vm41_vm0, %v339_v8  ;;  %v69_v11 = vsel %vm67_vm7, %v1360_v26, %v66_v9  ;;  %v381_v12 = vpop.permute.xlu0 %380  ;;  %v177_v15 = vld [vmem:[#allocation2 + $0x58] sm:$0xff] }
  0xce   :  { %v383_v13 = vsel %vm142_vm2, %v379_v43, %v381_v12  ;;  %230 = vmatpush.msra.mxu1 %v69_v11  ;;  %75 = vst.msk [vmem:[#allocation2 + $0x40] sm:$0xff] %vm41_vm0, %v66_v9  ;;  %249 = vmatpush.msra.mxu2 %v177_v15  ;;  %v34_v43 = vld [vmem:[%s1740_s7] sm:$0x7]  ;;  %vm594_vm2 = vcmask 146432  }
  0xcf   :  { %459 = vmatpush.msrb.mxu0 %v383_v13  ;;  %389 = vst.msk [vmem:[#allocation2 + $0xb8] sm:$0xff] %vm41_vm0, %v381_v12  ;;  %v1444_v44 = vperm.slane %v34_v43, 0  ;;  %v1456_v49 = vperm.slane %v34_v43, 2 }
  0xd0   :  { %231 = vmatpush.msra.mxu1 %v54_v14 }
  0xd2   :  { %232 = vmatpush.msra.mxu1 %v1259_v3  ;;  %v171_v3 = vld [vmem:[#allocation2 + $0x28] sm:$0xff] }
  0xd3   :  { %1131 = vmatmul.msk.f32.vlgmr.msra.gmra.mxu1 %vm193_vm9, %v1399_v16 }
  0xd4   :  { %478 = vmatpush.msrb.mxu1 %v430_v18  ;;  %v367_v19 = vpop.permute.xlu1 %366  ;;  %v297_v24 = vpop.permute.xlu2 %296 }
  0xd5   :  { %v369_v20 = vsel %vm127_vm3, %v1363_v30, %v367_v19  ;;  %375 = vst.msk [vmem:[#allocation2 + $0xa0] sm:$0xff] %vm41_vm0, %v367_v19  ;;  %v323_v21 = vpop.permute.xlu0 %322  ;;  %v174_v23 = vld [vmem:[#allocation2 + $0x40] sm:$0xff]  ;;  %v418_v30 = vld [vmem:[#allocation2 + $0x70] sm:$0xff]  ;;  %vm576_vm3 = vcmask 154624  }
  0xd6   :  { %v326_v22 = vsel %vm82_vm6, %v321_v52, %v323_v21  ;;  %460 = vmatpush.msrb.mxu0 %v369_v20  ;;  %250 = vmatpush.msra.mxu2 %v174_v23  ;;  %v427_v5 = vld [vmem:[#allocation2 + $0xb8] sm:$0xff]  ;;  %305 = vst.msk [vmem:[#allocation2 + $0x28] sm:$0xff] %vm41_vm0, %v297_v24 }
  0xd7   :  { %443 = vmatpush.msra.mxu3 %v326_v22  ;;  %479 = vmatpush.msrb.mxu1 %v427_v5  ;;  %v1183_v22 = vmov 0  }
  0xd8   :  { %461 = vmatpush.msrb.mxu0 %v355_v4  ;;  %251 = vmatpush.msra.mxu2 %v171_v3 }
  0xd9   :  { %1163 = vset.pattern.permute.xlu0 %v1183_v22  ;;  %1164 = vset.pattern.permute.xlu1 %v1183_v22 }
  0xda   :  { %462 = vmatpush.msrb.mxu0 %v341_v10  ;;  %252 = vmatpush.msra.mxu2 %v168_v17 }
  0xdb   :  { %1132 = vmatmul.msk.f32.vlgmr.msra.gmra.mxu2 %vm193_vm9, %v1399_v16  ;;  %1165 = vset.pattern.permute.xlu2 %v1183_v22 }
  0xdc   :  { %v309_v25 = vpop.permute.xlu1 %308  ;;  %v424_v26 = vld [vmem:[#allocation2 + $0xa0] sm:$0xff] }
  0xdd   :  { %v307_v28 = vpop.permute.xlu0 %306  ;;  %480 = vmatpush.msrb.mxu1 %v424_v26  ;;  %v409_v41 = vld [vmem:[#allocation2 + $0x28] sm:$0xff] }
  0xde   :  { %v312_v29 = vsel %vm67_vm7, %v307_v28, %v309_v25 }
  0xdf   :  { %444 = vmatpush.msra.mxu3 %v312_v29  ;;  %481 = vmatpush.msrb.mxu1 %v421_v27 }
  0xe1   :  { %482 = vmatpush.msrb.mxu1 %v418_v30 }
  0xe4   :  { %v295_v32 = vpop.permute.xlu1 %294 }
  0xe5   :  { %v293_v33 = vpop.permute.xlu0 %292  ;;  %v299_v34 = vsel %vm52_vm8, %v295_v32, %v297_v24 }
  0xe6   :  { %v298_v35 = vsel %vm52_vm8, %v293_v33, %v295_v32 }
  0xe7   :  { %445 = vmatpush.msra.mxu3 %v298_v35 }
  0xe9   :  { %446 = vmatpush.msra.mxu3 %v1247_v1 }
  0xea   :  { %1136 = vmatmul.msk.f32.vlgmr.msra.gmra.mxu3 %vm193_vm9, %v1399_v16 }
  0xec   :  { %v311_v36 = vpop.permute.xlu1 %310 }
  0xed   :  { %v313_v37 = vsel %vm67_vm7, %v309_v25, %v311_v36  ;;  %319 = vst.msk [vmem:[#allocation2 + $0x40] sm:$0xff] %vm41_vm0, %v311_v36  ;;  %v325_v38 = vpop.permute.xlu0 %324 }
  0xee   :  { %v327_v39 = vsel %vm82_vm6, %v323_v21, %v325_v38  ;;  %333 = vst.msk [vmem:[#allocation2 + $0x58] sm:$0xff] %vm41_vm0, %v325_v38  ;;  %v514_v38 = vld [vmem:[%s1741_s3] sm:$0xff]  ;;  %s1184_s3 = smov 111  }
  0xef   :  { %463 = vmatpush.msrb.mxu0 %v327_v39 }
  0xf1   :  { %464 = vmatpush.msrb.mxu0 %v313_v37 }
  0xf3   :  { %465 = vmatpush.msrb.mxu0 %v299_v34 }
  0xf4   :  { %v412_v40 = vld [vmem:[#allocation2 + $0x40] sm:$0xff] }
  0xf5   :  { %466 = vmatpush.msrb.mxu0 %v1254_v2  ;;  %v415_v1 = vld [vmem:[#allocation2 + $0x58] sm:$0xff]  ;;  %v1446_v2 = vperm.slane %v34_v43, 1 }
  0xf6   :  { %1137 = vmatmul.msk.f32.vlgmr.msrb.gmra.mxu0 %vm193_vm9, %v1399_v16  ;;  %483 = vmatpush.msrb.mxu1 %v415_v1 }
  0xf8   :  { %484 = vmatpush.msrb.mxu1 %v412_v40 }
  0xfa   :  { %485 = vmatpush.msrb.mxu1 %v409_v41  ;;  %v527_v41 = vld [vmem:[%s1742_s4] sm:$0xff] }
  0xfc   :  { %486 = vmatpush.msrb.mxu1 %v406_v42 }
  0xfd   :  { %1138 = vmatmul.msk.f32.vlgmr.msrb.gmra.mxu1 %vm193_vm9, %v1399_v16 }
 0x119   :  { %v1478_v16 = vpop.permute.xlu0 %622 }
 0x11a   :  { %v1480_v17 = vpop.permute.xlu1 %568 }
 0x121   :  { %v1482_v18 = vpop.permute.xlu0 %604 }
 0x122   :  { %v1484_v19 = vpop.permute.xlu1 %889 }
 0x129   :  { %v1486_v20 = vpop.permute.xlu0 %586 }
 0x137   :  { %v1448_v45 = vpop.f32.mrf.mxu0 }
 0x138   :  { %v264_v47 = vmul.f32 %v1444_v44, %v1448_v45 }
 0x13a   :  { %v273_v50 = vmul.f32 %v264_v47, %v264_v47 }
 0x150   :  { %v1450_v46 = vpop.f32.mrf.mxu1 }
 0x151   :  { %v265_v48 = vmul.f32 %v1446_v2, %v1450_v46 }
 0x153   :  { %v274_v51 = vmul.f32 %v265_v48, %v265_v48  ;;  %v267_v53 = vadd.f32 %v265_v48, %v264_v47 }
 0x155   :  { %v276_v55 = vadd.f32 %v274_v51, %v273_v50 }
 0x15e   :  { %v1458_v52 = vpop.f32.mrf.mxu2 }
 0x15f   :  { %v266_v54 = vmul.f32 %v1456_v49, %v1458_v52 }
 0x161   :  { %v275_v56 = vmul.f32 %v266_v54, %v266_v54  ;;  %v268_v57 = vsel %vm41_vm0, %v266_v54, 0.0 }
 0x162   :  { %v269_v58 = vadd.f32 %v268_v57, %v267_v53 }
 0x163   :  { %v277_v59 = vsel %vm41_vm0, %v275_v56, 0.0 }
 0x164   :  { %270 = vadd.xlane.f32.xlu0 %v269_v58  ;;  %v278_v60 = vadd.f32 %v277_v59, %v276_v55 }
 0x166   :  { %279 = vadd.xlane.f32.xlu2 %v278_v60 }
 0x16d   :  { %v1464_v61 = vpop.f32.mrf.mxu3 }
 0x16e   :  { %v491_v63 = vmul.f32 %v1464_v61, %v1444_v44 }
 0x170   :  { %v500_v6 = vmul.f32 %v491_v63, %v491_v63 }
 0x173   :  { %v1466_v62 = vpop.f32.mrf.mxu0 }
 0x174   :  { %v492_v4 = vmul.f32 %v1466_v62, %v1446_v2 }
 0x176   :  { %v501_v7 = vmul.f32 %v492_v4, %v492_v4  ;;  %v494_v8 = vadd.f32 %v492_v4, %v491_v63 }
 0x178   :  { %v503_v10 = vadd.f32 %v501_v7, %v500_v6 }
 0x17a   :  { %v1472_v0 = vpop.f32.mrf.mxu1 }
 0x17b   :  { %v493_v9 = vmul.f32 %v1472_v0, %v1456_v49 }
 0x17d   :  { %v502_v11 = vmul.f32 %v493_v9, %v493_v9  ;;  %v495_v12 = vsel %vm41_vm0, %v493_v9, 0.0 }
 0x17e   :  { %v496_v13 = vadd.f32 %v495_v12, %v494_v8 }
 0x17f   :  { %v504_v14 = vsel %vm41_vm0, %v502_v11, 0.0 }
 0x180   :  { %497 = vadd.xlane.f32.xlu1 %v496_v13  ;;  %v505_v15 = vadd.f32 %v504_v14, %v503_v10 }
 0x182   :  { %506 = vadd.xlane.f32.xlu2 %v505_v15 }
 0x1d7   :  { %v271_v23 = vpop.xlane.xlu0 %270 }
 0x1d9   :  { %v280_v21 = vpop.xlane.xlu2 %279 }
 0x1f3   :  { %v498_v3 = vpop.xlane.xlu1 %497 }
 0x1f4   :  { %v499_v24 = vadd.f32 %v498_v3, %v271_v23 }
 0x1f5   :  { %v507_v5 = vpop.xlane.xlu2 %506 }
 0x1f6   :  { %v509_v25 = vmul.f32 0.001953125, %v499_v24  ;;  %v508_v26 = vadd.f32 %v507_v5, %v280_v21 }
 0x1f8   :  { %v511_v27 = vmul.f32 %v509_v25, %v509_v25  ;;  %v510_v28 = vmul.f32 0.001953125, %v508_v26 }
 0x1fa   :  { %v512_v29 = vsub.f32 %v510_v28, %v511_v27 }
 0x1fc   :  { %v513_v30 = vmax.f32 %v512_v29, 0.0 }
 0x1fe   :  { %v515_v32 = vadd.f32 1e-05, %v513_v30 }
 0x200   :  { %1166 = vrsqrt.f32 %v515_v32  ;;  %vm522_vm11 = vweird.f32 %v515_v32 }
 0x206   :  { %v1167_v33 = vpop.eup %1166 }
 0x207   :  { %v517_v34 = vmul.f32 %v1167_v33, %v515_v32  ;;  %vm523_vm10 = vweird.f32 %v1167_v33 }
 0x208   :  { %vm524_vm12 = vmor %vm522_vm11, %vm523_vm10 }
 0x209   :  { %v518_v35 = vmul.f32 %v1167_v33, %v517_v34 }
 0x20b   :  { %v519_v36 = vmul.f32 0.5, %v518_v35 }
 0x20d   :  { %v520_v37 = vsub.f32 1.5, %v519_v36 }
 0x20f   :  { %v521_v39 = vmul.f32 %v1167_v33, %v520_v37 }
 0x211   :  { %v525_v1 = vsel %vm524_vm12, %v1167_v33, %v521_v39 }
 0x212   :  { %v526_v40 = vmul.f32 %v525_v1, %v514_v38 }
 0x214   :  { %537 = vperm.xlu0 %1163, %v526_v40   ;;  %v528_v42 = vmul.f32 %v526_v40, %v509_v25 }
 0x216   :  { %v529_v43 = vsub.f32 %v527_v41, %v528_v42 }
 0x218   :  { %545 = vperm.xlu1 %1164, %v529_v43  }
 0x286   :  { %v538_v47 = vpop.permute.xlu0 %537 }
 0x287   :  { %v540_v48 = vmul.f32 %v538_v47, %v1448_v45  ;;  %v541_v50 = vmul.f32 %v538_v47, %v1450_v46  ;;  %v542_v51 = vmul.f32 %v538_v47, %v1458_v52  ;;  %v815_v53 = vmul.f32 %v538_v47, %v1464_v61 }
 0x288   :  { %v816_v54 = vmul.f32 %v538_v47, %v1466_v62  ;;  %v817_v60 = vmul.f32 %v538_v47, %v1472_v0 }
 0x28a   :  { %v546_v55 = vpop.permute.xlu1 %545 }
 0x28b   :  { %v548_v56 = vadd.f32 %v546_v55, %v540_v48  ;;  %v549_v57 = vadd.f32 %v546_v55, %v541_v50  ;;  %v550_v58 = vadd.f32 %v546_v55, %v542_v51  ;;  %v818_v59 = vadd.f32 %v815_v53, %v546_v55 }
 0x28c   :  { %v819_v63 = vadd.f32 %v816_v54, %v546_v55  ;;  %v820_v8 = vadd.f32 %v817_v60, %v546_v55 }
 0x28d   :  { %v551_v4 = vmax.f32 %v548_v56, 0.0  ;;  %v552_v6 = vmax.f32 %v549_v57, 0.0  ;;  %v553_v7 = vmax.f32 %v550_v58, 0.0  ;;  %v821_v45 = vmax.f32 %v818_v59, 0.0 }
 0x28e   :  { %v822_v46 = vmax.f32 %v819_v63, 0.0  ;;  %v823_v10 = vmax.f32 %v820_v8, 0.0 }
 0x28f   :  { %v1502_v52 = vmul.f32 %v551_v4, %v1444_v44  ;;  %v1505_v61 = vmul.f32 %v552_v6, %v1446_v2  ;;  %v556_v62 = vmul.f32 %v553_v7, %v1456_v49  ;;  %v1509_v9 = vmul.f32 %v821_v45, %v1444_v44 }
 0x290   :  { %v1512_v0 = vmul.f32 %v822_v46, %v1446_v2  ;;  %v826_v11 = vmul.f32 %v823_v10, %v1456_v49 }
 0x291   :  { %559 = vst.msk [vmem:[#allocation3 + $0x18] sm:$0xff] %vm41_vm0, %v556_v62  ;;  %688 = vrot.lane.b32.xlu1 %v1505_v61, %s1174_s23  ;;  %686 = vrot.lane.b32.xlu2 %v1502_v52, %s1174_s23 }
 0x298   :  { %v563_v12 = vld [vmem:[#allocation3 + $0x18] sm:$0xff] }
 0x299   :  { %829 = vst.msk [vmem:[#allocation3 + $0x18] sm:$0xff] %vm41_vm0, %v826_v11  ;;  %676 = vrot.lane.b32.xlu0 %v563_v12, %s1175_s24  ;;  %672 = vrot.lane.b32.xlu1 %v1502_v52, %s1175_s24 }
 0x29a   :  { %642 = vst.msk [vmem:[#allocation4 + $0x70] sm:$0xff] %vm41_vm0, %v563_v12  ;;  %690 = vrot.lane.b32.xlu2 %v563_v12, %s1174_s23 }
 0x2a0   :  { %v1526_v44 = vld [vmem:[#allocation3 + $0x18] sm:$0xff] }
 0x2a1   :  { %661 = vrot.lane.b32.xlu0 %v563_v12, %s1184_s3  ;;  %657 = vrot.lane.b32.xlu1 %v1502_v52, %s1184_s3  ;;  %v1531_v2 = vld [vmem:[#allocation4 + $0x70] sm:$0xff] }
 0x2a2   :  { %674 = vrot.lane.b32.xlu2 %v1505_v61, %s1175_s24  ;;  %908 = vst.msk [vmem:[#allocation4 + $0x70] sm:$0xff] %vm41_vm0, %v1526_v44 }
 0x2a9   :  { %647 = vrot.lane.b32.xlu0 %v563_v12, %s1177_s26  ;;  %643 = vrot.lane.b32.xlu1 %v1502_v52, %s1177_s26 }
 0x2aa   :  { %659 = vrot.lane.b32.xlu2 %v1505_v61, %s1184_s3 }
 0x2b1   :  { %592 = vrot.lane.b32.xlu0 %v563_v12, %s1182_s11  ;;  %624 = vrot.lane.b32.xlu1 %v1502_v52, %s1179_s1 }
 0x2b2   :  { %645 = vrot.lane.b32.xlu2 %v1505_v61, %s1177_s26 }
 0x2b9   :  { %572 = vrot.lane.b32.xlu0 %v1505_v61, %s1180_s30  ;;  %606 = vrot.lane.b32.xlu1 %v1502_v52, %s1181_s10 }
 0x2ba   :  { %626 = vrot.lane.b32.xlu2 %v1505_v61, %s1179_s1 }
 0x2c1   :  { %939 = vrot.lane.b32.xlu0 %v1512_v0, %s1175_s24  ;;  %588 = vrot.lane.b32.xlu1 %v1502_v52, %s1182_s11 }
 0x2c2   :  { %628 = vrot.lane.b32.xlu2 %v563_v12, %s1179_s1 }
 0x2c9   :  { %925 = vrot.lane.b32.xlu0 %v1512_v0, %s1184_s3  ;;  %953 = vrot.lane.b32.xlu1 %v1512_v0, %s1174_s23 }
 0x2ca   :  { %608 = vrot.lane.b32.xlu2 %v1505_v61, %s1181_s10 }
 0x2d1   :  { %911 = vrot.lane.b32.xlu0 %v1512_v0, %s1177_s26  ;;  %941 = vrot.lane.b32.xlu1 %v1526_v44, %s1175_s24 }
 0x2d2   :  { %610 = vrot.lane.b32.xlu2 %v563_v12, %s1181_s10 }
 0x2d9   :  { %891 = vrot.lane.b32.xlu0 %v1509_v9, %s1179_s1  ;;  %927 = vrot.lane.b32.xlu1 %v1526_v44, %s1184_s3 }
 0x2da   :  { %590 = vrot.lane.b32.xlu2 %v1505_v61, %s1182_s11 }
 0x2e1   :  { %895 = vrot.lane.b32.xlu0 %v1526_v44, %s1179_s1  ;;  %913 = vrot.lane.b32.xlu1 %v1526_v44, %s1177_s26 }
 0x2e2   :  { %570 = vrot.lane.b32.xlu2 %v1502_v52, %s1180_s30 }
 0x2e9   :  { %909 = vrot.lane.b32.xlu0 %v1509_v9, %s1177_s26  ;;  %937 = vrot.lane.b32.xlu1 %v1509_v9, %s1175_s24 }
 0x2ea   :  { %574 = vrot.lane.b32.xlu2 %v563_v12, %s1180_s30 }
 0x2eb   :  { %v687_v49 = vpop.permute.xlu2 %686 }
 0x2f1   :  { %859 = vrot.lane.b32.xlu0 %v1512_v0, %s1182_s11  ;;  %893 = vrot.lane.b32.xlu1 %v1512_v0, %s1179_s1 }
 0x2f2   :  { %955 = vrot.lane.b32.xlu2 %v1526_v44, %s1174_s23 }
 0x2f4   :  { %v691_v13 = vpop.permute.xlu2 %690 }
 0x2f5   :  { %699 = vst.msk [vmem:[#allocation4 + $0xd0] sm:$0xff] %vm41_vm0, %v691_v13 }
 0x2f9   :  { %842 = vrot.lane.b32.xlu0 %v1512_v0, %s1180_s30  ;;  %874 = vrot.lane.b32.xlu1 %v1509_v9, %s1181_s10 }
 0x2fa   :  { %951 = vrot.lane.b32.xlu2 %v1509_v9, %s1174_s23 }
 0x2fc   :  { %v675_v14 = vpop.permute.xlu2 %674  ;;  %v726_v15 = vld [vmem:[#allocation4 + $0xd0] sm:$0xff] }
 0x2fd   :  { %777 = vmatpush.msra.mxu0 %v726_v15 }
 0x301   :  { %872 = vrot.lane.b32.xlu0 %v1178_v31, %s1181_s10  ;;  %878 = vrot.lane.b32.xlu1 %v1526_v44, %s1181_s10 }
 0x302   :  { %923 = vrot.lane.b32.xlu2 %v1509_v9, %s1184_s3 }
 0x303   :  { %v689_v21 = vpop.permute.xlu1 %688 }
 0x304   :  { %v692_v22 = vsel %vm97_vm5, %v687_v49, %v689_v21  ;;  %v693_v23 = vsel %vm97_vm5, %v689_v21, %v691_v13  ;;  %v660_v3 = vpop.permute.xlu2 %659 }
 0x305   :  { %737 = vmatpush.msrb.mxu2 %v692_v22  ;;  %757 = vmatpush.msrb.mxu3 %v693_v23 }
 0x309   :  { %861 = vrot.lane.b32.xlu1 %v1526_v44, %s1182_s11 }
 0x30a   :  { %876 = vrot.lane.b32.xlu2 %v1512_v0, %s1181_s10 }
 0x30b   :  { %v677_v24 = vpop.permute.xlu0 %676  ;;  %v673_v5 = vpop.permute.xlu1 %672 }
 0x30c   :  { %v679_v25 = vsel %vm82_vm6, %v675_v14, %v677_v24  ;;  %685 = vst.msk [vmem:[#allocation4 + $0xb8] sm:$0xff] %vm41_vm0, %v677_v24  ;;  %v678_v26 = vsel %vm82_vm6, %v673_v5, %v675_v14  ;;  %v646_v27 = vpop.permute.xlu2 %645 }
 0x30d   :  { %758 = vmatpush.msrb.mxu3 %v679_v25  ;;  %738 = vmatpush.msrb.mxu2 %v678_v26 }
 0x311   :  { %855 = vrot.lane.b32.xlu1 %v1178_v31, %s1182_s11 }
 0x312   :  { %857 = vrot.lane.b32.xlu2 %v1509_v9, %s1182_s11 }
 0x313   :  { %v662_v28 = vpop.permute.xlu0 %661  ;;  %v723_v29 = vld [vmem:[#allocation4 + $0xb8] sm:$0xff]  ;;  %v658_v30 = vpop.permute.xlu1 %657 }
 0x314   :  { %v665_v32 = vsel %vm663_vm14, %v660_v3, %v662_v28  ;;  %671 = vst.msk [vmem:[#allocation4 + $0xa0] sm:$0xff] %vm41_vm0, %v662_v28  ;;  %778 = vmatpush.msra.mxu0 %v723_v29  ;;  %v664_v33 = vsel %vm663_vm14, %v658_v30, %v660_v3  ;;  %v627_v34 = vpop.permute.xlu2 %626 }
 0x315   :  { %759 = vmatpush.msrb.mxu3 %v665_v32  ;;  %739 = vmatpush.msrb.mxu2 %v664_v33  ;;  %v979_v33 = vld [vmem:[#allocation4 + $0x70] sm:$0xff] }
 0x31a   :  { %840 = vrot.lane.b32.xlu2 %v1509_v9, %s1180_s30 }
 0x31b   :  { %v648_v35 = vpop.permute.xlu0 %647  ;;  %v720_v36 = vld [vmem:[#allocation4 + $0xa0] sm:$0xff]  ;;  %v644_v37 = vpop.permute.xlu1 %643 }
 0x31c   :  { %v650_v38 = vsel %vm52_vm8, %v646_v27, %v648_v35  ;;  %656 = vst.msk [vmem:[#allocation4 + $0x88] sm:$0xff] %vm41_vm0, %v648_v35  ;;  %779 = vmatpush.msra.mxu0 %v720_v36  ;;  %v649_v39 = vsel %vm52_vm8, %v644_v37, %v646_v27  ;;  %v629_v1 = vpop.permute.xlu2 %628 }
 0x31d   :  { %v633_v40 = vsel %vm630_vm15, %v627_v34, %v629_v1  ;;  %760 = vmatpush.msrb.mxu3 %v650_v38  ;;  %740 = vmatpush.msrb.mxu2 %v649_v39 }
 0x31e   :  { %639 = vst.msk [vmem:[#allocation4 + $0x58] sm:$0xff] %vm41_vm0, %v633_v40 }
 0x31f   :  { %761 = vmatpush.msrb.mxu3 %v1505_v61  ;;  %741 = vmatpush.msrb.mxu2 %v1502_v52 }
 0x322   :  { %844 = vrot.lane.b32.xlu2 %v1526_v44, %s1180_s30 }
 0x323   :  { %v593_v41 = vpop.permute.xlu0 %592  ;;  %v717_v42 = vld [vmem:[#allocation4 + $0x88] sm:$0xff]  ;;  %v625_v43 = vpop.permute.xlu1 %624 }
 0x324   :  { %780 = vmatpush.msra.mxu0 %v717_v42  ;;  %v631_v47 = vsel %vm630_vm15, %v1478_v16, %v625_v43  ;;  %v632_v48 = vsel %vm630_vm15, %v625_v43, %v627_v34  ;;  %v609_v50 = vpop.permute.xlu2 %608 }
 0x325   :  { %742 = vmatpush.msrb.mxu2 %v631_v47  ;;  %762 = vmatpush.msrb.mxu3 %v632_v48  ;;  %v711_v51 = vld [vmem:[#allocation4 + $0x58] sm:$0xff] }
 0x326   :  { %781 = vmatpush.msra.mxu0 %v1531_v2 }
 0x328   :  { %782 = vmatpush.msra.mxu0 %v711_v51 }
 0x32a   :  { %838 = vrot.lane.b32.xlu2 %v1178_v31, %s1180_s30 }
 0x32b   :  { %v573_v53 = vpop.permute.xlu0 %572  ;;  %v607_v54 = vpop.permute.xlu1 %606 }
 0x32c   :  { %v613_v55 = vsel %vm612_vm1, %v1482_v18, %v607_v54  ;;  %v614_v16 = vsel %vm612_vm1, %v607_v54, %v609_v50  ;;  %v611_v56 = vpop.permute.xlu2 %610 }
 0x32d   :  { %v615_v57 = vsel %vm612_vm1, %v609_v50, %v611_v56  ;;  %743 = vmatpush.msrb.mxu2 %v613_v55  ;;  %763 = vmatpush.msrb.mxu3 %v614_v16 }
 0x32e   :  { %621 = vst.msk [vmem:[#allocation4 + $0x40] sm:$0xff] %vm41_vm0, %v615_v57 }
 0x333   :  { %v940_v58 = vpop.permute.xlu0 %939  ;;  %v589_v59 = vpop.permute.xlu1 %588 }
 0x334   :  { %v595_v31 = vsel %vm594_vm2, %v1486_v20, %v589_v59  ;;  %v591_v60 = vpop.permute.xlu2 %590 }
 0x335   :  { %v596_v63 = vsel %vm594_vm2, %v589_v59, %v591_v60  ;;  %v597_v18 = vsel %vm594_vm2, %v591_v60, %v593_v41  ;;  %v708_v4 = vld [vmem:[#allocation4 + $0x40] sm:$0xff]  ;;  %744 = vmatpush.msrb.mxu2 %v595_v31 }
 0x336   :  { %603 = vst.msk [vmem:[#allocation4 + $0x28] sm:$0xff] %vm41_vm0, %v597_v18  ;;  %783 = vmatpush.msra.mxu0 %v708_v4  ;;  %764 = vmatpush.msrb.mxu3 %v596_v63  ;;  %v35_v4 = vld [vmem:[%s1744_s8] sm:$0x7] }
 0x33b   :  { %v926_v6 = vpop.permute.xlu0 %925  ;;  %v954_v7 = vpop.permute.xlu1 %953 }
 0x33c   :  { %v571_v45 = vpop.permute.xlu2 %570 }
 0x33d   :  { %v577_v8 = vsel %vm576_vm3, %v1480_v17, %v571_v45  ;;  %v578_v20 = vsel %vm576_vm3, %v571_v45, %v573_v53  ;;  %v705_v46 = vld [vmem:[#allocation4 + $0x28] sm:$0xff]  ;;  %v791_v45 = vperm.slane %v35_v4, 0 }
 0x33e   :  { %784 = vmatpush.msra.mxu0 %v705_v46  ;;  %745 = vmatpush.msrb.mxu2 %v577_v8  ;;  %v792_v8 = vperm.slane %v35_v4, 1 }
 0x33f   :  { %765 = vmatpush.msrb.mxu3 %v578_v20 }
 0x343   :  { %v912_v52 = vpop.permute.xlu0 %911  ;;  %v942_v61 = vpop.permute.xlu1 %941 }
 0x344   :  { %v575_v62 = vpop.permute.xlu2 %574  ;;  %v944_v10 = vsel %vm82_vm6, %v940_v58, %v942_v61  ;;  %950 = vst.msk [vmem:[#allocation4 + $0xb8] sm:$0xff] %vm41_vm0, %v942_v61 }
 0x345   :  { %v579_v11 = vsel %vm576_vm3, %v573_v53, %v575_v62 }
 0x346   :  { %585 = vst.msk [vmem:[#allocation4 + $0x10] sm:$0xff] %vm41_vm0, %v579_v11 }
 0x34b   :  { %v892_v12 = vpop.permute.xlu0 %891  ;;  %v928_v44 = vpop.permute.xlu1 %927  ;;  %v988_v24 = vld [vmem:[#allocation4 + $0xb8] sm:$0xff] }
 0x34c   :  { %v897_v17 = vsel %vm630_vm15, %v1484_v19, %v892_v12  ;;  %v956_v2 = vpop.permute.xlu2 %955  ;;  %936 = vst.msk [vmem:[#allocation4 + $0xa0] sm:$0xff] %vm41_vm0, %v928_v44  ;;  %v930_v13 = vsel %vm663_vm14, %v926_v6, %v928_v44 }
 0x34d   :  { %v958_v49 = vsel %vm97_vm5, %v954_v7, %v956_v2  ;;  %v702_v14 = vld [vmem:[#allocation4 + $0x10] sm:$0xff]  ;;  %964 = vst.msk [vmem:[#allocation4 + $0xd0] sm:$0xff] %vm41_vm0, %v956_v2 }
 0x34e   :  { %785 = vmatpush.msra.mxu0 %v702_v14  ;;  %1019 = vmatpush.msra.mxu2 %v958_v49 }
 0x350   :  { %1020 = vmatpush.msra.mxu2 %v944_v10 }
 0x352   :  { %1021 = vmatpush.msra.mxu2 %v930_v13 }
 0x353   :  { %v896_v15 = vpop.permute.xlu0 %895  ;;  %v914_v21 = vpop.permute.xlu1 %913  ;;  %v985_v5 = vld [vmem:[#allocation4 + $0xa0] sm:$0xff] }
 0x354   :  { %v916_v22 = vsel %vm52_vm8, %v912_v52, %v914_v21  ;;  %922 = vst.msk [vmem:[#allocation4 + $0x88] sm:$0xff] %vm41_vm0, %v914_v21  ;;  %v952_v19 = vpop.permute.xlu2 %951  ;;  %v991_v3 = vld [vmem:[#allocation4 + $0xd0] sm:$0xff] }
 0x355   :  { %v957_v23 = vsel %vm97_vm5, %v952_v19, %v954_v7  ;;  %1022 = vmatpush.msra.mxu2 %v916_v22  ;;  %1039 = vmatpush.msra.mxu3 %v991_v3 }
 0x356   :  { %999 = vmatpush.msra.mxu1 %v957_v23 }
 0x357   :  { %1023 = vmatpush.msra.mxu2 %v1512_v0  ;;  %1040 = vmatpush.msra.mxu3 %v988_v24  ;;  %v33_v0 = vld [vmem:[%s1743_s2] sm:$0xff] }
 0x358   :  { %1139 = vmatmul.msk.f32.vlgmr.msrb.gmra.mxu2 %vm193_vm9, %v33_v0  ;;  %1140 = vmatmul.msk.f32.vlgmr.msrb.gmra.mxu3 %vm193_vm9, %v33_v0 }
 0x359   :  { %1041 = vmatpush.msra.mxu3 %v985_v5  ;;  %1141 = vmatmul.msk.f32.vlgmr.msra.gmra.mxu0 %vm193_vm9, %v33_v0 }
 0x35b   :  { %v910_v25 = vpop.permute.xlu0 %909  ;;  %v938_v26 = vpop.permute.xlu1 %937  ;;  %v982_v27 = vld [vmem:[#allocation4 + $0x88] sm:$0xff] }
 0x35c   :  { %v915_v28 = vsel %vm52_vm8, %v910_v25, %v912_v52  ;;  %v943_v29 = vsel %vm82_vm6, %v938_v26, %v940_v58  ;;  %v924_v30 = vpop.permute.xlu2 %923  ;;  %1042 = vmatpush.msra.mxu3 %v982_v27 }
 0x35d   :  { %v929_v32 = vsel %vm663_vm14, %v924_v30, %v926_v6  ;;  %1000 = vmatpush.msra.mxu1 %v943_v29  ;;  %v793_v6 = vperm.slane %v35_v4, 2 }
 0x35e   :  { %1043 = vmatpush.msra.mxu3 %v979_v33 }
 0x35f   :  { %1001 = vmatpush.msra.mxu1 %v929_v32 }
 0x361   :  { %1002 = vmatpush.msra.mxu1 %v915_v28 }
 0x363   :  { %v860_v34 = vpop.permute.xlu0 %859  ;;  %v894_v35 = vpop.permute.xlu1 %893  ;;  %1003 = vmatpush.msra.mxu1 %v1509_v9 }
 0x364   :  { %v898_v36 = vsel %vm630_vm15, %v892_v12, %v894_v35  ;;  %v899_v37 = vsel %vm630_vm15, %v894_v35, %v896_v15  ;;  %v877_v38 = vpop.permute.xlu2 %876 }
 0x365   :  { %1004 = vmatpush.msra.mxu1 %v897_v17  ;;  %1024 = vmatpush.msra.mxu2 %v898_v36  ;;  %905 = vst.msk [vmem:[#allocation4 + $0x58] sm:$0xff] %vm41_vm0, %v899_v37 }
 0x36b   :  { %v843_v39 = vpop.permute.xlu0 %842  ;;  %v875_v1 = vpop.permute.xlu1 %874 }
 0x36c   :  { %v881_v40 = vsel %vm612_vm1, %v875_v1, %v877_v38  ;;  %v858_v41 = vpop.permute.xlu2 %857  ;;  %v976_v43 = vld [vmem:[#allocation4 + $0x58] sm:$0xff] }
 0x36d   :  { %v864_v42 = vsel %vm594_vm2, %v858_v41, %v860_v34  ;;  %1025 = vmatpush.msra.mxu2 %v881_v40  ;;  %1044 = vmatpush.msra.mxu3 %v976_v43 }
 0x36f   :  { %1026 = vmatpush.msra.mxu2 %v864_v42 }
 0x373   :  { %v873_v9 = vpop.permute.xlu0 %872  ;;  %v879_v47 = vpop.permute.xlu1 %878 }
 0x374   :  { %v880_v48 = vsel %vm612_vm1, %v873_v9, %v875_v1  ;;  %v882_v50 = vsel %vm612_vm1, %v877_v38, %v879_v47  ;;  %v841_v51 = vpop.permute.xlu2 %840 }
 0x375   :  { %v847_v53 = vsel %vm576_vm3, %v841_v51, %v843_v39  ;;  %1005 = vmatpush.msra.mxu1 %v880_v48  ;;  %888 = vst.msk [vmem:[#allocation4 + $0x40] sm:$0xff] %vm41_vm0, %v882_v50 }
 0x376   :  { %1027 = vmatpush.msra.mxu2 %v847_v53 }
 0x377   :  { %1143 = vmatmul.msk.f32.vlgmr.msra.gmra.mxu2 %vm193_vm9, %v33_v0 }
 0x37b   :  { %v862_v54 = vpop.permute.xlu1 %861 }
 0x37c   :  { %v865_v55 = vsel %vm594_vm2, %v860_v34, %v862_v54  ;;  %v845_v16 = vpop.permute.xlu2 %844  ;;  %v973_v57 = vld [vmem:[#allocation4 + $0x40] sm:$0xff] }
 0x37d   :  { %871 = vst.msk [vmem:[#allocation4 + $0x28] sm:$0xff] %vm41_vm0, %v865_v55  ;;  %v848_v56 = vsel %vm576_vm3, %v843_v39, %v845_v16  ;;  %1045 = vmatpush.msra.mxu3 %v973_v57  ;;  %v1088_v16 = vld [vmem:[%s1746_s6] sm:$0xff] }
 0x37e   :  { %854 = vst.msk [vmem:[#allocation4 + $0x10] sm:$0xff] %vm41_vm0, %v848_v56 }
 0x383   :  { %v856_v58 = vpop.permute.xlu1 %855 }
 0x384   :  { %v863_v59 = vsel %vm594_vm2, %v856_v58, %v858_v41  ;;  %v839_v31 = vpop.permute.xlu2 %838  ;;  %v970_v60 = vld [vmem:[#allocation4 + $0x28] sm:$0xff] }
 0x385   :  { %v846_v63 = vsel %vm576_vm3, %v839_v31, %v841_v51  ;;  %1046 = vmatpush.msra.mxu3 %v970_v60  ;;  %1006 = vmatpush.msra.mxu1 %v863_v59  ;;  %v967_v18 = vld [vmem:[#allocation4 + $0x10] sm:$0xff]  ;;  %v1075_v51 = vld [vmem:[%s1745_s5] sm:$0xff] }
 0x387   :  { %1047 = vmatpush.msra.mxu3 %v967_v18  ;;  %1007 = vmatpush.msra.mxu1 %v846_v63 }
 0x388   :  { %1144 = vmatmul.msk.f32.vlgmr.msra.gmra.mxu3 %vm193_vm9, %v33_v0  ;;  %1142 = vmatmul.msk.f32.vlgmr.msra.gmra.mxu1 %vm193_vm9, %v33_v0 }
 0x3d6   :  { %v1696_v7 = vpop.f32.mrf.mxu0 }
 0x3d7   :  { %v799_v20 = vmul.f32 %v793_v6, %v1696_v7 }
 0x3d9   :  { %v808_v10 = vmul.f32 %v799_v20, %v799_v20  ;;  %v801_v11 = vsel %vm41_vm0, %v799_v20, 0.0 }
 0x3db   :  { %v1699_v46 = vpop.f32.mrf.mxu2  ;;  %v1701_v52 = vpop.f32.mrf.mxu3  ;;  %v810_v13 = vsel %vm41_vm0, %v808_v10, 0.0 }
 0x3dc   :  { %v797_v61 = vmul.f32 %v791_v45, %v1699_v46  ;;  %v798_v62 = vmul.f32 %v792_v8, %v1701_v52 }
 0x3de   :  { %v806_v12 = vmul.f32 %v797_v61, %v797_v61  ;;  %v807_v44 = vmul.f32 %v798_v62, %v798_v62  ;;  %v800_v17 = vadd.f32 %v798_v62, %v797_v61 }
 0x3e0   :  { %v802_v2 = vadd.f32 %v801_v11, %v800_v17  ;;  %v809_v49 = vadd.f32 %v807_v44, %v806_v12 }
 0x3e2   :  { %803 = vadd.xlane.f32.xlu0 %v802_v2  ;;  %v811_v14 = vadd.f32 %v810_v13, %v809_v49 }
 0x3e4   :  { %812 = vadd.xlane.f32.xlu2 %v811_v14 }
 0x3fa   :  { %v1029_v15 = vpop.f32.mrf.mxu2 }
 0x3fb   :  { %v1053_v22 = vmul.f32 %v1029_v15, %v792_v8 }
 0x3fd   :  { %v1062_v3 = vmul.f32 %v1053_v22, %v1053_v22 }
 0x405   :  { %v1009_v21 = vpop.f32.mrf.mxu1 }
 0x406   :  { %v1052_v19 = vmul.f32 %v1009_v21, %v791_v45 }
 0x408   :  { %v1061_v23 = vmul.f32 %v1052_v19, %v1052_v19  ;;  %v1055_v24 = vadd.f32 %v1053_v22, %v1052_v19 }
 0x40a   :  { %v1064_v26 = vadd.f32 %v1062_v3, %v1061_v23 }
 0x40b   :  { %v1049_v5 = vpop.f32.mrf.mxu3 }
 0x40c   :  { %v1054_v25 = vmul.f32 %v1049_v5, %v793_v6 }
 0x40e   :  { %v1063_v27 = vmul.f32 %v1054_v25, %v1054_v25  ;;  %v1056_v28 = vsel %vm41_vm0, %v1054_v25, 0.0 }
 0x40f   :  { %v1057_v29 = vadd.f32 %v1056_v28, %v1055_v24 }
 0x410   :  { %v1065_v30 = vsel %vm41_vm0, %v1063_v27, 0.0 }
 0x411   :  { %1058 = vadd.xlane.f32.xlu1 %v1057_v29  ;;  %v1066_v32 = vadd.f32 %v1065_v30, %v1064_v26 }
 0x413   :  { %1067 = vadd.xlane.f32.xlu0 %v1066_v32 }
 0x455   :  { %v804_v33 = vpop.xlane.xlu0 %803 }
 0x457   :  { %v813_v35 = vpop.xlane.xlu2 %812 }
 0x484   :  { %v1059_v0 = vpop.xlane.xlu1 %1058 }
 0x485   :  { %v1060_v34 = vadd.f32 %v1059_v0, %v804_v33 }
 0x486   :  { %v1068_v36 = vpop.xlane.xlu0 %1067 }
 0x487   :  { %v1070_v37 = vmul.f32 0.001953125, %v1060_v34  ;;  %v1069_v38 = vadd.f32 %v1068_v36, %v813_v35 }
 0x489   :  { %v1072_v39 = vmul.f32 %v1070_v37, %v1070_v37  ;;  %v1071_v1 = vmul.f32 0.001953125, %v1069_v38 }
 0x48b   :  { %v1073_v40 = vsub.f32 %v1071_v1, %v1072_v39 }
 0x48d   :  { %v1074_v41 = vmax.f32 %v1073_v40, 0.0 }
 0x48f   :  { %v1076_v42 = vadd.f32 1e-05, %v1074_v41 }
 0x491   :  { %1168 = vrsqrt.f32 %v1076_v42  ;;  %vm1083_vm5 = vweird.f32 %v1076_v42 }
 0x497   :  { %v1169_v43 = vpop.eup %1168 }
 0x498   :  { %v1078_v9 = vmul.f32 %v1169_v43, %v1076_v42  ;;  %vm1084_vm4 = vweird.f32 %v1169_v43 }
 0x499   :  { %vm1085_vm6 = vmor %vm1083_vm5, %vm1084_vm4 }
 0x49a   :  { %v1079_v47 = vmul.f32 %v1169_v43, %v1078_v9 }
 0x49c   :  { %v1080_v48 = vmul.f32 0.5, %v1079_v47 }
 0x49e   :  { %v1081_v50 = vsub.f32 1.5, %v1080_v48 }
 0x4a0   :  { %v1082_v53 = vmul.f32 %v1169_v43, %v1081_v50 }
 0x4a2   :  { %v1086_v54 = vsel %vm1085_vm6, %v1169_v43, %v1082_v53 }
 0x4a3   :  { %v1087_v55 = vmul.f32 %v1086_v54, %v1075_v51 }
 0x4a5   :  { %1093 = vperm.xlu1 %1164, %v1087_v55   ;;  %v1089_v56 = vmul.f32 %v1087_v55, %v1070_v37 }
 0x4a7   :  { %v1090_v57 = vsub.f32 %v1088_v16, %v1089_v56 }
 0x4a9   :  { %1101 = vperm.xlu2 %1165, %v1090_v57  }
 0x503   :  { %v1102_v18 = vpop.permute.xlu2 %1101 }
 0x517   :  { %v1094_v58 = vpop.permute.xlu1 %1093 }
 0x518   :  { %v1096_v59 = vmul.f32 %v1094_v58, %v1699_v46  ;;  %v1097_v31 = vmul.f32 %v1094_v58, %v1701_v52  ;;  %v1098_v60 = vmul.f32 %v1094_v58, %v1696_v7  ;;  %v1113_v63 = vmul.f32 %v1094_v58, %v1009_v21 }
 0x519   :  { %v1114_v4 = vmul.f32 %v1094_v58, %v1029_v15  ;;  %v1115_v6 = vmul.f32 %v1094_v58, %v1049_v5 }
 0x51a   :  { %v1104_v45 = vadd.f32 %v1102_v18, %v1096_v59  ;;  %v1105_v8 = vadd.f32 %v1102_v18, %v1097_v31  ;;  %v1106_v20 = vadd.f32 %v1102_v18, %v1098_v60  ;;  %v1116_v61 = vadd.f32 %v1113_v63, %v1102_v18 }
 0x51b   :  { %v1117_v62 = vadd.f32 %v1114_v4, %v1102_v18  ;;  %v1118_v10 = vadd.f32 %v1115_v6, %v1102_v18 }
 0x51c   :  { %v1107_v11 = vmax.f32 %v1104_v45, 0.0  ;;  %v1108_v12 = vmax.f32 %v1105_v8, 0.0  ;;  %v1109_v44 = vmax.f32 %v1106_v20, 0.0  ;;  %v1119_v17 = vmax.f32 %v1116_v61, 0.0 }
 0x51d   :  { %v1120_v46 = vmax.f32 %v1117_v62, 0.0  ;;  %v1121_v7 = vmax.f32 %v1118_v10, 0.0 }
 0x51e   :  { %1110 = vst [vmem:[%s1747_s9] sm:$0xff] %v1107_v11 }
 0x51f   :  { %1111 = vst [vmem:[%s1747_s9 + $0x8] sm:$0xff] %v1108_v12 }
 0x520   :  { %1112 = vst.msk [vmem:[%s1747_s9 + $0x10] sm:$0xff] %vm41_vm0, %v1109_v44 }
 0x521   :  { %1145 = vst [vmem:[%s1747_s9 + $0x18] sm:$0xff] %v1119_v17 }
 0x522   :  { %1146 = vst [vmem:[%s1747_s9 + $0x20] sm:$0xff] %v1120_v46 }
 0x523   :  { %1147 = vst.msk [vmem:[%s1747_s9 + $0x28] sm:$0xff] %vm41_vm0, %v1121_v7 }

</bundles_post_ra>
